<compile_context>
chip_gen: v5e
topology: v5e:2x2
jax: 0.10.0
libtpu: 0.0.40
codegen_flags: <defaults>
</compile_context>

<pallas_src>
import jax
import jax.numpy as jnp
from jax.experimental import pallas as pl
from jax.experimental.pallas import tpu as pltpu


# ---------------------------------------------------------------------------
# Kernel 1: fused (Linear + ReLU) x 3  — layers 1..3, single grid step.
# ---------------------------------------------------------------------------
def _mlp3_kernel(x_ref, w1_ref, b1_ref, w2_ref, b2_ref, w3_ref, b3_ref, o_ref):
    h = jnp.dot(x_ref[...], w1_ref[...], preferred_element_type=jnp.float32)
    h = jnp.maximum(h + b1_ref[...], 0.0)
    h = jnp.dot(h, w2_ref[...], preferred_element_type=jnp.float32)
    h = jnp.maximum(h + b2_ref[...], 0.0)
    h = jnp.dot(h, w3_ref[...], preferred_element_type=jnp.float32)
    h = jnp.maximum(h + b3_ref[...], 0.0)
    o_ref[...] = h.astype(o_ref.dtype)


def mlp3_fused(x, w1, b1, w2, b2, w3, b3):
    """ReLU(ReLU(ReLU(x@w1+b1)@w2+b2)@w3+b3) in one pallas_call."""
    B = x.shape[0]
    N = w3.shape[1]

    def full(shape):  # full-array block, single grid step
        return pl.BlockSpec(shape, lambda i: (0,) * len(shape))

    return pl.pallas_call(
        _mlp3_kernel,
        out_shape=jax.ShapeDtypeStruct((B, N), x.dtype),
        grid_spec=pltpu.PrefetchScalarGridSpec(
            num_scalar_prefetch=0,
            grid=(1,),
            in_specs=[
                full(x.shape),
                full(w1.shape), full((1, w1.shape[1])),
                full(w2.shape), full((1, w2.shape[1])),
                full(w3.shape), full((1, w3.shape[1])),
            ],
            out_specs=full((B, N)),
        ),
        compiler_params=pltpu.CompilerParams(
            dimension_semantics=("arbitrary",)),
    )(x, w1, b1.reshape(1, -1), w2, b2.reshape(1, -1), w3, b3.reshape(1, -1))


# ---------------------------------------------------------------------------
# Kernel 2: last Linear (bf16 weight) + Tanh, tiled over output columns.
# ---------------------------------------------------------------------------
def _linear_tanh_bf16_kernel(x_ref, w_ref, b_ref, o_ref):
    # bf16 x bf16 dot is the native MXU path; accumulation stays f32.
    x = x_ref[...].astype(w_ref.dtype)
    y = jnp.dot(x, w_ref[...], preferred_element_type=jnp.float32)
    y = jnp.tanh(y + b_ref[...])
    o_ref[...] = y.astype(o_ref.dtype)


def linear_tanh_bf16(x, w_bf16, b, tn=2048):
    """tanh(x @ w + b) with bf16 weight streamed in (K, tn) column tiles."""
    B, K = x.shape
    Kw, N = w_bf16.shape
    assert K == Kw and N % tn == 0, (K, Kw, N, tn)
    return pl.pallas_call(
        _linear_tanh_bf16_kernel,
        out_shape=jax.ShapeDtypeStruct((B, N), x.dtype),
        grid_spec=pltpu.PrefetchScalarGridSpec(
            num_scalar_prefetch=0,
            grid=(N // tn,),
            in_specs=[
                pl.BlockSpec((B, K), lambda j: (0, 0)),   # activation, reused
                pl.BlockSpec((K, tn), lambda j: (0, j)),  # bf16 weight tile (4 MiB)
                pl.BlockSpec((1, tn), lambda j: (0, j)),  # bias tile (f32)
            ],
            out_specs=pl.BlockSpec((B, tn), lambda j: (0, j)),
        ),
        compiler_params=pltpu.CompilerParams(
            dimension_semantics=("parallel",)),  # 6 tiles -> 3/3 on v7x megacore
    )(x, w_bf16, b.reshape(1, -1))


# ---------------------------------------------------------------------------
# Generator parameters + forward
# ---------------------------------------------------------------------------
def init_generator_params(key, noise_dim, img_channels, dtype=jnp.float32):
    dims = [noise_dim, 256, 512, 1024, img_channels * 64 * 64]
    params = []
    for i in range(4):
        key, kw, kb = jax.random.split(key, 3)
        fan_in = dims[i]
        bound = 1.0 / jnp.sqrt(fan_in)  # PyTorch nn.Linear default init range
        w = jax.random.uniform(kw, (dims[i], dims[i + 1]), dtype,
                               minval=-bound, maxval=bound)
        b = jax.random.uniform(kb, (dims[i + 1],), dtype,
                               minval=-bound, maxval=bound)
        if i == 3:
            # Dominant weight (1024 x C*64*64): store in bf16 to halve the
            # HBM stream that bounds the whole forward pass.
            w = w.astype(jnp.bfloat16)
        params.append((w, b))
    return params


def generator_forward(params, z, img_channels):
    (w1, b1), (w2, b2), (w3, b3), (w4, b4) = params
    h = mlp3_fused(z, w1, b1, w2, b2, w3, b3)      # (B, 1024), f32
    h = linear_tanh_bf16(h, w4, b4, tn=2048)       # (B, C*64*64), f32
    B = z.shape[0]
    return h.reshape(B, img_channels, 64, 64)      # NCHW, like PyTorch .view()


# ---------------------------------------------------------------------------
# Pure-JAX reference (same dtypes / accumulation) for a sanity check
# ---------------------------------------------------------------------------
def generator_forward_ref(params, z, img_channels):
    (w1, b1), (w2, b2), (w3, b3), (w4, b4) = params
    hp = jax.lax.Precision.HIGHEST
    h = jnp.maximum(jnp.dot(z, w1, precision=hp,
                            preferred_element_type=jnp.float32) + b1, 0.0)
    h = jnp.maximum(jnp.dot(h, w2, precision=hp,
                            preferred_element_type=jnp.float32) + b2, 0.0)
    h = jnp.maximum(jnp.dot(h, w3, precision=hp,
                            preferred_element_type=jnp.float32) + b3, 0.0)
    y = jnp.dot(h.astype(w4.dtype), w4,
                preferred_element_type=jnp.float32) + b4
    h = jnp.tanh(y)
    return h.reshape(z.shape[0], img_channels, 64, 64)


if __name__ == "__main__":
    key = jax.random.PRNGKey(0)
    noise_dim = 32
    img_channels = 3
    batch = 2

    kp, kz = jax.random.split(key)
    params = init_generator_params(kp, noise_dim, img_channels)
    z = jax.random.normal(kz, (batch, noise_dim), dtype=jnp.float32)

    out = generator_forward(params, z, img_channels)
    out = jax.block_until_ready(out)

    ref = generator_forward_ref(params, z, img_channels)
    assert out.shape == (batch, img_channels, 64, 64), out.shape
    # Tolerance covers bf16 last-layer weight quantization + accumulation-order
    # differences between the MXU kernel and the XLA reference.
    assert jnp.allclose(out, ref, atol=2e-2, rtol=2e-2), float(
        jnp.max(jnp.abs(out - ref)))

    print("KERNEL_OK")
</pallas_src>

<mosaic_0001>
module attributes {stable_mosaic.version = 11 : i64} {
  func.func @_mlp3_kernel(%arg0: i32, %arg1: memref<2x32xf32, #tpu.memory_space<vmem>>, %arg2: memref<32x256xf32, #tpu.memory_space<vmem>>, %arg3: memref<1x256xf32, #tpu.memory_space<vmem>>, %arg4: memref<256x512xf32, #tpu.memory_space<vmem>>, %arg5: memref<1x512xf32, #tpu.memory_space<vmem>>, %arg6: memref<512x1024xf32, #tpu.memory_space<vmem>>, %arg7: memref<1x1024xf32, #tpu.memory_space<vmem>>, %arg8: memref<2x1024xf32, #tpu.memory_space<vmem>>) attributes {dimension_semantics = [#tpu.dimension_semantics<arbitrary>], iteration_bounds = array<i64: 1>, scalar_prefetch = 0 : i64, scratch_operands = 0 : i64, tpu.core_type = #tpu.core_type<tc>, window_params = [{pipeline_mode = #tpu.pipeline_mode<synchronous>, transform_indices = @transform_0, window_bounds = array<i64: 2, 32>}, {pipeline_mode = #tpu.pipeline_mode<synchronous>, transform_indices = @transform_1, window_bounds = array<i64: 32, 256>}, {pipeline_mode = #tpu.pipeline_mode<synchronous>, transform_indices = @transform_2, window_bounds = array<i64: 1, 256>}, {pipeline_mode = #tpu.pipeline_mode<synchronous>, transform_indices = @transform_3, window_bounds = array<i64: 256, 512>}, {pipeline_mode = #tpu.pipeline_mode<synchronous>, transform_indices = @transform_4, window_bounds = array<i64: 1, 512>}, {pipeline_mode = #tpu.pipeline_mode<synchronous>, transform_indices = @transform_5, window_bounds = array<i64: 512, 1024>}, {pipeline_mode = #tpu.pipeline_mode<synchronous>, transform_indices = @transform_6, window_bounds = array<i64: 1, 1024>}, {pipeline_mode = #tpu.pipeline_mode<synchronous>, transform_indices = @transform_7, window_bounds = array<i64: 2, 1024>}]} {
    %c0 = arith.constant 0 : index
    %c0_0 = arith.constant 0 : index
    %0 = vector.load %arg1[%c0, %c0_0] : memref<2x32xf32, #tpu.memory_space<vmem>>, vector<2x32xf32>
    %c0_1 = arith.constant 0 : index
    %c0_2 = arith.constant 0 : index
    %1 = vector.load %arg2[%c0_1, %c0_2] : memref<32x256xf32, #tpu.memory_space<vmem>>, vector<32x256xf32>
    %cst = arith.constant dense<0.000000e+00> : vector<2x256xf32>
    %2 = tpu.matmul %0, %1, %cst {dimension_numbers = #tpu.dot_dimension_numbers<[1], [0], [0], [1], [0, 0, 1, 1], [], []>} : vector<2x32xf32>, vector<32x256xf32>, vector<2x256xf32> -> vector<2x256xf32>
    %c0_3 = arith.constant 0 : index
    %c0_4 = arith.constant 0 : index
    %3 = vector.load %arg3[%c0_3, %c0_4] : memref<1x256xf32, #tpu.memory_space<vmem>>, vector<1x256xf32>
    %4 = vector.broadcast %3 : vector<1x256xf32> to vector<2x256xf32>
    %5 = arith.addf %2, %4 : vector<2x256xf32>
    %cst_5 = arith.constant 0.000000e+00 : f32
    %6 = vector.broadcast %cst_5 : f32 to vector<2x256xf32>
    %7 = arith.maximumf %5, %6 : vector<2x256xf32>
    %c0_6 = arith.constant 0 : index
    %c0_7 = arith.constant 0 : index
    %8 = vector.load %arg4[%c0_6, %c0_7] : memref<256x512xf32, #tpu.memory_space<vmem>>, vector<256x512xf32>
    %cst_8 = arith.constant dense<0.000000e+00> : vector<2x512xf32>
    %9 = tpu.matmul %7, %8, %cst_8 {dimension_numbers = #tpu.dot_dimension_numbers<[1], [0], [0], [1], [0, 0, 1, 1], [], []>} : vector<2x256xf32>, vector<256x512xf32>, vector<2x512xf32> -> vector<2x512xf32>
    %c0_9 = arith.constant 0 : index
    %c0_10 = arith.constant 0 : index
    %10 = vector.load %arg5[%c0_9, %c0_10] : memref<1x512xf32, #tpu.memory_space<vmem>>, vector<1x512xf32>
    %11 = vector.broadcast %10 : vector<1x512xf32> to vector<2x512xf32>
    %12 = arith.addf %9, %11 : vector<2x512xf32>
    %cst_11 = arith.constant 0.000000e+00 : f32
    %13 = vector.broadcast %cst_11 : f32 to vector<2x512xf32>
    %14 = arith.maximumf %12, %13 : vector<2x512xf32>
    %c0_12 = arith.constant 0 : index
    %c0_13 = arith.constant 0 : index
    %15 = vector.load %arg6[%c0_12, %c0_13] : memref<512x1024xf32, #tpu.memory_space<vmem>>, vector<512x1024xf32>
    %cst_14 = arith.constant dense<0.000000e+00> : vector<2x1024xf32>
    %16 = tpu.matmul %14, %15, %cst_14 {dimension_numbers = #tpu.dot_dimension_numbers<[1], [0], [0], [1], [0, 0, 1, 1], [], []>} : vector<2x512xf32>, vector<512x1024xf32>, vector<2x1024xf32> -> vector<2x1024xf32>
    %c0_15 = arith.constant 0 : index
    %c0_16 = arith.constant 0 : index
    %17 = vector.load %arg7[%c0_15, %c0_16] : memref<1x1024xf32, #tpu.memory_space<vmem>>, vector<1x1024xf32>
    %18 = vector.broadcast %17 : vector<1x1024xf32> to vector<2x1024xf32>
    %19 = arith.addf %16, %18 : vector<2x1024xf32>
    %cst_17 = arith.constant 0.000000e+00 : f32
    %20 = vector.broadcast %cst_17 : f32 to vector<2x1024xf32>
    %21 = arith.maximumf %19, %20 : vector<2x1024xf32>
    %c0_18 = arith.constant 0 : index
    %c0_19 = arith.constant 0 : index
    %22 = vector.load %arg8[%c0_18, %c0_19] : memref<2x1024xf32, #tpu.memory_space<vmem>>, vector<2x1024xf32>
    tpu.vector_store %arg8[%c0_18, %c0_19], %21 {strides = array<i32>} : memref<2x1024xf32, #tpu.memory_space<vmem>>, vector<2x1024xf32>,
    return
  }
  func.func @transform_0(%arg0: i32) -> (i32, i32) {
    %c0_i32 = arith.constant 0 : i32
    %c0_i32_0 = arith.constant 0 : i32
    %c0_i32_1 = arith.constant 0 : i32
    return %c0_i32, %c0_i32_0 : i32, i32
  }
  func.func @transform_1(%arg0: i32) -> (i32, i32) {
    %c0_i32 = arith.constant 0 : i32
    %c0_i32_0 = arith.constant 0 : i32
    %c0_i32_1 = arith.constant 0 : i32
    return %c0_i32, %c0_i32_0 : i32, i32
  }
  func.func @transform_2(%arg0: i32) -> (i32, i32) {
    %c0_i32 = arith.constant 0 : i32
    %c0_i32_0 = arith.constant 0 : i32
    %c0_i32_1 = arith.constant 0 : i32
    return %c0_i32, %c0_i32_0 : i32, i32
  }
  func.func @transform_3(%arg0: i32) -> (i32, i32) {
    %c0_i32 = arith.constant 0 : i32
    %c0_i32_0 = arith.constant 0 : i32
    %c0_i32_1 = arith.constant 0 : i32
    return %c0_i32, %c0_i32_0 : i32, i32
  }
  func.func @transform_4(%arg0: i32) -> (i32, i32) {
    %c0_i32 = arith.constant 0 : i32
    %c0_i32_0 = arith.constant 0 : i32
    %c0_i32_1 = arith.constant 0 : i32
    return %c0_i32, %c0_i32_0 : i32, i32
  }
  func.func @transform_5(%arg0: i32) -> (i32, i32) {
    %c0_i32 = arith.constant 0 : i32
    %c0_i32_0 = arith.constant 0 : i32
    %c0_i32_1 = arith.constant 0 : i32
    return %c0_i32, %c0_i32_0 : i32, i32
  }
  func.func @transform_6(%arg0: i32) -> (i32, i32) {
    %c0_i32 = arith.constant 0 : i32
    %c0_i32_0 = arith.constant 0 : i32
    %c0_i32_1 = arith.constant 0 : i32
    return %c0_i32, %c0_i32_0 : i32, i32
  }
  func.func @transform_7(%arg0: i32) -> (i32, i32) {
    %c0_i32 = arith.constant 0 : i32
    %c0_i32_0 = arith.constant 0 : i32
    %c0_i32_1 = arith.constant 0 : i32
    return %c0_i32, %c0_i32_0 : i32, i32
  }
}

</mosaic_0001>

<bundles_post_ra>
// kernel: tpu_custom_call.1
= control target key start
LH: loop header
LB: loop body
LE: loop exit
PB: predicated region body
PF: predicated region fallthrough
CT: control target
= control target key end

     0   :  { %12 = vsyncpa [#allocation3], 0  ;;  %s2080_s0 = inlined_call_operand.hbm [shape: f32[2,32], index: 0, kind: input, shape index: {}]   ;;  %s2081_s1 = inlined_call_operand.hbm [shape: f32[32,256], index: 1, kind: input, shape index: {}]   ;;  %s2082_s2 = inlined_call_operand.hbm [shape: f32[1,256], index: 2, kind: input, shape index: {}]   ;;  %s2083_s3 = inlined_call_operand.hbm [shape: f32[256,512], index: 3, kind: input, shape index: {}]   ;;  %s2084_s4 = inlined_call_operand.hbm [shape: f32[1,512], index: 4, kind: input, shape index: {}]   ;;  %s2085_s5 = inlined_call_operand.hbm [shape: f32[512,1024], index: 5, kind: input, shape index: {}]   ;;  %s2086_s6 = inlined_call_operand.hbm [shape: f32[1,1024], index: 6, kind: input, shape index: {}]   ;;  %s2087_s7 = inlined_call_operand.hbm [shape: f32[2,1024], index: 7, kind: output, shape index: {}]  }
   0x1   :  { %13 = vsyncpa [#allocation6], 0 }
   0x2   :  { %14 = vsyncpa [#allocation9], 0 }
   0x3   :  { %15 = vsyncpa [#allocation12], 0  ;;  %s32_s26 = sshll.u32 %s2081_s1, 4  ;;  %s33_s26 = int_to_ptr.hbm [resolvable:$true] %s32_s26 }
   0x4   :  { %16 = vsyncpa [#allocation4], 0  ;;  %s1934_s27 = smov [#allocation5]   ;;  %s56_s8 = sshll.u32 %s2083_s3, 4  ;;  %s57_s8 = int_to_ptr.hbm [resolvable:$true] %s56_s8 }
   0x5   :  { %s34_s28 = sshll.u32 %s1934_s27, 4  ;;  %s1935_s9 = smov 256   ;;  %s35_s28 = int_to_ptr.vmem [resolvable:$true] %s34_s28 }
   0x6   :  { %s1936_s10 = smov 16   ;;  %s1937_s11 = smov [#allocation8]  }
   0x7   :  { %40 = dma.hbm_to_vmem [thread:$0]  %s33_s26, 1024, %s35_s28, [#allocation6], %s1935_s9, %s1935_s9, %s1936_s10  }
   0x8   :  { %s58_s12 = sshll.u32 %s1937_s11, 4  ;;  %s1938_s13 = smov 512   ;;  %s59_s12 = int_to_ptr.vmem [resolvable:$true] %s58_s12 }
   0x9   :  { %s1939_s14 = smov 32   ;;  %s80_s16 = sshll.u32 %s2085_s5, 4  ;;  %s81_s16 = int_to_ptr.hbm [resolvable:$true] %s80_s16 }
   0xa   :  { %64 = dma.hbm_to_vmem [thread:$0]  %s57_s8, 16384, %s59_s12, [#allocation9], %s1938_s13, %s1938_s13, %s1939_s14  }
   0xb   :  { %s1940_s17 = smov [#allocation11]   ;;  %s22_s20 = sshll.u32 %s2080_s0, 4  ;;  %s23_s20 = int_to_ptr.hbm [resolvable:$true] %s22_s20 }
   0xc   :  { %s82_s18 = sshll.u32 %s1940_s17, 4  ;;  %s1941_s21 = smov 1024   ;;  %s83_s18 = int_to_ptr.vmem [resolvable:$true] %s82_s18 }
   0xd   :  { %s1942_s22 = smov 64   ;;  %s1943_s23 = smov [#allocation2]  }
   0xe   :  { %88 = dma.hbm_to_vmem [thread:$0]  %s81_s16, 65536, %s83_s18, [#allocation12], %s1941_s21, %s1941_s21, %s1942_s22  }
   0xf   :  { %s24_s24 = sshll.u32 %s1943_s23, 4  ;;  %s46_s27 = sshll.u32 %s2082_s2, 4  ;;  %s25_s24 = int_to_ptr.vmem [resolvable:$true] %s24_s24  ;;  %s47_s27 = int_to_ptr.hbm [resolvable:$true] %s46_s27 }
  0x10   :  { %27 = dma.hbm_to_vmem [thread:$0]  %s23_s20, 32, %s25_s24, [#allocation3]  }
  0x11   :  { %s70_s29 = sshll.u32 %s2084_s4, 4  ;;  %s1944_s30 = smov [#allocation7]   ;;  %s71_s29 = int_to_ptr.hbm [resolvable:$true] %s70_s29 }
  0x12   :  { %s48_s8 = sshll.u32 %s1944_s30, 4  ;;  %s1945_s0 = smov [#allocation10]   ;;  %s49_s8 = int_to_ptr.vmem [resolvable:$true] %s48_s8 }
  0x13   :  { %51 = dma.hbm_to_vmem [thread:$0]  %s47_s27, 32, %s49_s8, [#allocation6]  }
  0x14   :  { %s72_s9 = sshll.u32 %s1945_s0, 4  ;;  %s94_s12 = sshll.u32 %s2086_s6, 4  ;;  %s73_s9 = int_to_ptr.vmem [resolvable:$true] %s72_s9  ;;  %s95_s12 = int_to_ptr.hbm [resolvable:$true] %s94_s12 }
  0x15   :  { %75 = dma.hbm_to_vmem [thread:$0]  %s71_s29, 64, %s73_s9, [#allocation9]  }
  0x16   :  { %s1946_s2 = smov [#allocation13]  }
  0x17   :  { %s96_s13 = sshll.u32 %s1946_s2, 4  ;;  %s97_s13 = int_to_ptr.vmem [resolvable:$true] %s96_s13 }
  0x18   :  { %99 = dma.hbm_to_vmem [thread:$0]  %s95_s12, 128, %s97_s13, [#allocation12]  }
  0x19   :  { %1924 = dma.done.wait [#allocation3], 32  }
  0x1a   :  { %1925 = vsyncadd [#allocation3], 4294967264 }
  0x1b   :  { %1926 = dma.done.wait [#allocation6], 1056  }
  0x1c   :  { %1927 = vsyncadd [#allocation6], 4294966240 }
  0x1d   :  { %1928 = dma.done.wait [#allocation9], 16448  }
  0x1e   :  { %1929 = vsyncadd [#allocation9], 4294950848 }
  0x1f   :  { %1930 = dma.done.wait [#allocation12], 65664  }
  0x20   :  { %1931 = vsyncadd [#allocation12], 4294901632  ;;  %v135_v0 = vld [vmem:[#allocation5 + $0x30] sm:$0xff]  ;;  %v136_v1 = vld [vmem:[#allocation5 + $0x38] sm:$0xff]  ;;  %vm143_vm0 = vcmask 261120   ;;  %vm1683_vm1 = vcmask 1041408  }
  0x21   :  { %v133_v2 = vld [vmem:[#allocation5 + $0x20] sm:$0xff]  ;;  %159 = vmatpush.msra.mxu0 %v135_v0  ;;  %179 = vmatpush.msra.mxu1 %v136_v1  ;;  %v134_v3 = vld [vmem:[#allocation5 + $0x28] sm:$0xff]  ;;  %v131_v4 = vld [vmem:[#allocation5 + $0x10] sm:$0xff]  ;;  %vm1685_vm2 = vcmask 1045508   ;;  %vm1687_vm3 = vcmask 1043456   ;;  %s1947_s4 = smov [#allocation14]  }
  0x22   :  { %v132_v5 = vld [vmem:[#allocation5 + $0x18] sm:$0xff]  ;;  %v129_v6 = vld [vmem:[#allocation5] sm:$0xff]  ;;  %v130_v9 = vld [vmem:[#allocation5 + $0x8] sm:$0xff]  ;;  %s1701_s6 = sshll.u32 %s1947_s4, 4  ;;  %s1703_s15 = sshll.u32 %s2087_s7, 4  ;;  %s1702_s6 = int_to_ptr.vmem [resolvable:$true] %s1701_s6  ;;  %s1704_s15 = int_to_ptr.hbm [resolvable:$true] %s1703_s15 }
  0x23   :  { %160 = vmatpush.msra.mxu0 %v133_v2  ;;  %180 = vmatpush.msra.mxu1 %v134_v3  ;;  %v249_v7 = vld [vmem:[#allocation8 + $0x1e0] sm:$0xff]  ;;  %v128_v12 = vld [vmem:[#allocation2] sm:$0x3]  ;;  %v250_v13 = vld [vmem:[#allocation8 + $0x1e8] sm:$0xff] }
  0x24   :  { %v313_v8 = vld [vmem:[#allocation8 + $0x3e0] sm:$0xff]  ;;  %327 = vmatpush.msra.mxu2 %v249_v7  ;;  %v314_v14 = vld [vmem:[#allocation8 + $0x3e8] sm:$0xff]  ;;  %v251_v7 = vld [vmem:[#allocation8 + $0x1f0] sm:$0xff] }
  0x25   :  { %347 = vmatpush.msra.mxu3 %v313_v8  ;;  %v245_v10 = vld [vmem:[#allocation8 + $0x1c0] sm:$0xff]  ;;  %161 = vmatpush.msra.mxu0 %v131_v4  ;;  %v246_v17 = vld [vmem:[#allocation8 + $0x1c8] sm:$0xff]  ;;  %v315_v8 = vld [vmem:[#allocation8 + $0x3f0] sm:$0xff] }
  0x26   :  { %v309_v11 = vld [vmem:[#allocation8 + $0x3c0] sm:$0xff]  ;;  %181 = vmatpush.msra.mxu1 %v132_v5  ;;  %328 = vmatpush.msra.mxu2 %v245_v10  ;;  %v310_v18 = vld [vmem:[#allocation8 + $0x3c8] sm:$0xff] }
  0x27   :  { %348 = vmatpush.msra.mxu3 %v309_v11  ;;  %162 = vmatpush.msra.mxu0 %v129_v6  ;;  %v241_v15 = vld [vmem:[#allocation8 + $0x1a0] sm:$0xff]  ;;  %v242_v21 = vld [vmem:[#allocation8 + $0x1a8] sm:$0xff]  ;;  %v252_v11 = vld [vmem:[#allocation8 + $0x1f8] sm:$0xff] }
  0x28   :  { %182 = vmatpush.msra.mxu1 %v130_v9  ;;  %v305_v16 = vld [vmem:[#allocation8 + $0x3a0] sm:$0xff]  ;;  %1716 = vmatmul.msk.f32.vlgmr.msra.gmra.mxu0 %vm143_vm0, %v128_v12  ;;  %v306_v22 = vld [vmem:[#allocation8 + $0x3a8] sm:$0xff] }
  0x29   :  { %1717 = vmatmul.msk.f32.vlgmr.msra.gmra.mxu1 %vm143_vm0, %v128_v12  ;;  %367 = vmatpush.msrb.mxu0 %v250_v13  ;;  %v237_v19 = vld [vmem:[#allocation8 + $0x180] sm:$0xff]  ;;  %v238_v25 = vld [vmem:[#allocation8 + $0x188] sm:$0xff]  ;;  %v316_v12 = vld [vmem:[#allocation8 + $0x3f8] sm:$0xff] }
  0x2a   :  { %387 = vmatpush.msrb.mxu1 %v314_v14  ;;  %v301_v20 = vld [vmem:[#allocation8 + $0x380] sm:$0xff]  ;;  %329 = vmatpush.msra.mxu2 %v241_v15  ;;  %v302_v26 = vld [vmem:[#allocation8 + $0x388] sm:$0xff]  ;;  %v247_v13 = vld [vmem:[#allocation8 + $0x1d0] sm:$0xff] }
  0x2b   :  { %349 = vmatpush.msra.mxu3 %v305_v16  ;;  %368 = vmatpush.msrb.mxu0 %v246_v17  ;;  %v233_v23 = vld [vmem:[#allocation8 + $0x160] sm:$0xff]  ;;  %v234_v29 = vld [vmem:[#allocation8 + $0x168] sm:$0xff]  ;;  %v311_v14 = vld [vmem:[#allocation8 + $0x3d0] sm:$0xff] }
  0x2c   :  { %388 = vmatpush.msrb.mxu1 %v310_v18  ;;  %v297_v24 = vld [vmem:[#allocation8 + $0x360] sm:$0xff]  ;;  %330 = vmatpush.msra.mxu2 %v237_v19  ;;  %v298_v30 = vld [vmem:[#allocation8 + $0x368] sm:$0xff]  ;;  %v248_v15 = vld [vmem:[#allocation8 + $0x1d8] sm:$0xff] }
  0x2d   :  { %350 = vmatpush.msra.mxu3 %v301_v20  ;;  %369 = vmatpush.msrb.mxu0 %v242_v21  ;;  %v229_v27 = vld [vmem:[#allocation8 + $0x140] sm:$0xff]  ;;  %v230_v33 = vld [vmem:[#allocation8 + $0x148] sm:$0xff]  ;;  %v312_v16 = vld [vmem:[#allocation8 + $0x3d8] sm:$0xff] }
  0x2e   :  { %389 = vmatpush.msrb.mxu1 %v306_v22  ;;  %v293_v28 = vld [vmem:[#allocation8 + $0x340] sm:$0xff]  ;;  %331 = vmatpush.msra.mxu2 %v233_v23  ;;  %v294_v34 = vld [vmem:[#allocation8 + $0x348] sm:$0xff]  ;;  %v243_v17 = vld [vmem:[#allocation8 + $0x1b0] sm:$0xff] }
  0x2f   :  { %351 = vmatpush.msra.mxu3 %v297_v24  ;;  %370 = vmatpush.msrb.mxu0 %v238_v25  ;;  %v225_v31 = vld [vmem:[#allocation8 + $0x120] sm:$0xff]  ;;  %v226_v37 = vld [vmem:[#allocation8 + $0x128] sm:$0xff]  ;;  %v307_v18 = vld [vmem:[#allocation8 + $0x3b0] sm:$0xff] }
  0x30   :  { %390 = vmatpush.msrb.mxu1 %v302_v26  ;;  %v289_v32 = vld [vmem:[#allocation8 + $0x320] sm:$0xff]  ;;  %332 = vmatpush.msra.mxu2 %v229_v27  ;;  %v290_v38 = vld [vmem:[#allocation8 + $0x328] sm:$0xff]  ;;  %v244_v19 = vld [vmem:[#allocation8 + $0x1b8] sm:$0xff] }
  0x31   :  { %352 = vmatpush.msra.mxu3 %v293_v28  ;;  %371 = vmatpush.msrb.mxu0 %v234_v29  ;;  %v221_v35 = vld [vmem:[#allocation8 + $0x100] sm:$0xff]  ;;  %v222_v41 = vld [vmem:[#allocation8 + $0x108] sm:$0xff]  ;;  %v308_v20 = vld [vmem:[#allocation8 + $0x3b8] sm:$0xff] }
  0x32   :  { %391 = vmatpush.msrb.mxu1 %v298_v30  ;;  %v285_v36 = vld [vmem:[#allocation8 + $0x300] sm:$0xff]  ;;  %333 = vmatpush.msra.mxu2 %v225_v31  ;;  %v286_v42 = vld [vmem:[#allocation8 + $0x308] sm:$0xff]  ;;  %v239_v21 = vld [vmem:[#allocation8 + $0x190] sm:$0xff] }
  0x33   :  { %353 = vmatpush.msra.mxu3 %v289_v32  ;;  %372 = vmatpush.msrb.mxu0 %v230_v33  ;;  %v217_v39 = vld [vmem:[#allocation8 + $0xe0] sm:$0xff]  ;;  %v218_v45 = vld [vmem:[#allocation8 + $0xe8] sm:$0xff]  ;;  %v303_v22 = vld [vmem:[#allocation8 + $0x390] sm:$0xff] }
  0x34   :  { %392 = vmatpush.msrb.mxu1 %v294_v34  ;;  %v281_v40 = vld [vmem:[#allocation8 + $0x2e0] sm:$0xff]  ;;  %334 = vmatpush.msra.mxu2 %v221_v35  ;;  %v282_v46 = vld [vmem:[#allocation8 + $0x2e8] sm:$0xff]  ;;  %v240_v23 = vld [vmem:[#allocation8 + $0x198] sm:$0xff] }
  0x35   :  { %354 = vmatpush.msra.mxu3 %v285_v36  ;;  %373 = vmatpush.msrb.mxu0 %v226_v37  ;;  %v213_v43 = vld [vmem:[#allocation8 + $0xc0] sm:$0xff]  ;;  %v214_v49 = vld [vmem:[#allocation8 + $0xc8] sm:$0xff]  ;;  %v304_v24 = vld [vmem:[#allocation8 + $0x398] sm:$0xff] }
  0x36   :  { %393 = vmatpush.msrb.mxu1 %v290_v38  ;;  %v277_v44 = vld [vmem:[#allocation8 + $0x2c0] sm:$0xff]  ;;  %335 = vmatpush.msra.mxu2 %v217_v39  ;;  %v278_v50 = vld [vmem:[#allocation8 + $0x2c8] sm:$0xff]  ;;  %v235_v25 = vld [vmem:[#allocation8 + $0x170] sm:$0xff] }
  0x37   :  { %355 = vmatpush.msra.mxu3 %v281_v40  ;;  %374 = vmatpush.msrb.mxu0 %v222_v41  ;;  %v209_v47 = vld [vmem:[#allocation8 + $0xa0] sm:$0xff]  ;;  %v210_v53 = vld [vmem:[#allocation8 + $0xa8] sm:$0xff]  ;;  %v299_v26 = vld [vmem:[#allocation8 + $0x370] sm:$0xff] }
  0x38   :  { %394 = vmatpush.msrb.mxu1 %v286_v42  ;;  %v273_v48 = vld [vmem:[#allocation8 + $0x2a0] sm:$0xff]  ;;  %336 = vmatpush.msra.mxu2 %v213_v43  ;;  %v274_v54 = vld [vmem:[#allocation8 + $0x2a8] sm:$0xff]  ;;  %v236_v27 = vld [vmem:[#allocation8 + $0x178] sm:$0xff] }
  0x39   :  { %356 = vmatpush.msra.mxu3 %v277_v44  ;;  %375 = vmatpush.msrb.mxu0 %v218_v45  ;;  %v205_v51 = vld [vmem:[#allocation8 + $0x80] sm:$0xff]  ;;  %v206_v57 = vld [vmem:[#allocation8 + $0x88] sm:$0xff]  ;;  %v300_v28 = vld [vmem:[#allocation8 + $0x378] sm:$0xff] }
  0x3a   :  { %395 = vmatpush.msrb.mxu1 %v282_v46  ;;  %v269_v52 = vld [vmem:[#allocation8 + $0x280] sm:$0xff]  ;;  %337 = vmatpush.msra.mxu2 %v209_v47  ;;  %v270_v58 = vld [vmem:[#allocation8 + $0x288] sm:$0xff]  ;;  %v231_v29 = vld [vmem:[#allocation8 + $0x150] sm:$0xff] }
  0x3b   :  { %357 = vmatpush.msra.mxu3 %v273_v48  ;;  %376 = vmatpush.msrb.mxu0 %v214_v49  ;;  %v201_v55 = vld [vmem:[#allocation8 + $0x60] sm:$0xff]  ;;  %v202_v61 = vld [vmem:[#allocation8 + $0x68] sm:$0xff]  ;;  %v295_v30 = vld [vmem:[#allocation8 + $0x350] sm:$0xff] }
  0x3c   :  { %396 = vmatpush.msrb.mxu1 %v278_v50  ;;  %v265_v56 = vld [vmem:[#allocation8 + $0x260] sm:$0xff]  ;;  %338 = vmatpush.msra.mxu2 %v205_v51  ;;  %v266_v62 = vld [vmem:[#allocation8 + $0x268] sm:$0xff]  ;;  %v232_v31 = vld [vmem:[#allocation8 + $0x158] sm:$0xff] }
  0x3d   :  { %358 = vmatpush.msra.mxu3 %v269_v52  ;;  %377 = vmatpush.msrb.mxu0 %v210_v53  ;;  %v197_v59 = vld [vmem:[#allocation8 + $0x40] sm:$0xff]  ;;  %v198_v1 = vld [vmem:[#allocation8 + $0x48] sm:$0xff]  ;;  %v296_v32 = vld [vmem:[#allocation8 + $0x358] sm:$0xff] }
  0x3e   :  { %397 = vmatpush.msrb.mxu1 %v274_v54  ;;  %v261_v60 = vld [vmem:[#allocation8 + $0x240] sm:$0xff]  ;;  %339 = vmatpush.msra.mxu2 %v201_v55  ;;  %v262_v2 = vld [vmem:[#allocation8 + $0x248] sm:$0xff]  ;;  %v227_v33 = vld [vmem:[#allocation8 + $0x130] sm:$0xff] }
  0x3f   :  { %359 = vmatpush.msra.mxu3 %v265_v56  ;;  %378 = vmatpush.msrb.mxu0 %v206_v57  ;;  %v193_v63 = vld [vmem:[#allocation8 + $0x20] sm:$0xff]  ;;  %v194_v5 = vld [vmem:[#allocation8 + $0x28] sm:$0xff]  ;;  %v291_v34 = vld [vmem:[#allocation8 + $0x330] sm:$0xff] }
  0x40   :  { %398 = vmatpush.msrb.mxu1 %v270_v58  ;;  %v257_v0 = vld [vmem:[#allocation8 + $0x220] sm:$0xff]  ;;  %340 = vmatpush.msra.mxu2 %v197_v59  ;;  %v258_v6 = vld [vmem:[#allocation8 + $0x228] sm:$0xff]  ;;  %v228_v35 = vld [vmem:[#allocation8 + $0x138] sm:$0xff] }
  0x41   :  { %360 = vmatpush.msra.mxu3 %v261_v60  ;;  %379 = vmatpush.msrb.mxu0 %v202_v61  ;;  %v189_v3 = vld [vmem:[#allocation8] sm:$0xff]  ;;  %v190_v9 = vld [vmem:[#allocation8 + $0x8] sm:$0xff]  ;;  %v292_v36 = vld [vmem:[#allocation8 + $0x338] sm:$0xff] }
  0x42   :  { %399 = vmatpush.msrb.mxu1 %v266_v62  ;;  %v253_v4 = vld [vmem:[#allocation8 + $0x200] sm:$0xff]  ;;  %341 = vmatpush.msra.mxu2 %v193_v63  ;;  %v254_v10 = vld [vmem:[#allocation8 + $0x208] sm:$0xff]  ;;  %v223_v37 = vld [vmem:[#allocation8 + $0x110] sm:$0xff] }
  0x43   :  { %361 = vmatpush.msra.mxu3 %v257_v0  ;;  %380 = vmatpush.msrb.mxu0 %v198_v1  ;;  %v287_v38 = vld [vmem:[#allocation8 + $0x310] sm:$0xff]  ;;  %v224_v39 = vld [vmem:[#allocation8 + $0x118] sm:$0xff] }
  0x44   :  { %400 = vmatpush.msrb.mxu1 %v262_v2  ;;  %342 = vmatpush.msra.mxu2 %v189_v3  ;;  %v288_v40 = vld [vmem:[#allocation8 + $0x318] sm:$0xff]  ;;  %v219_v41 = vld [vmem:[#allocation8 + $0xf0] sm:$0xff] }
  0x45   :  { %362 = vmatpush.msra.mxu3 %v253_v4  ;;  %381 = vmatpush.msrb.mxu0 %v194_v5  ;;  %v283_v42 = vld [vmem:[#allocation8 + $0x2f0] sm:$0xff]  ;;  %v220_v43 = vld [vmem:[#allocation8 + $0xf8] sm:$0xff] }
  0x46   :  { %401 = vmatpush.msrb.mxu1 %v258_v6  ;;  %407 = vmatpush.msrb.mxu2 %v251_v7  ;;  %v284_v44 = vld [vmem:[#allocation8 + $0x2f8] sm:$0xff]  ;;  %v215_v45 = vld [vmem:[#allocation8 + $0xd0] sm:$0xff] }
  0x47   :  { %427 = vmatpush.msrb.mxu3 %v315_v8  ;;  %382 = vmatpush.msrb.mxu0 %v190_v9  ;;  %v279_v46 = vld [vmem:[#allocation8 + $0x2d0] sm:$0xff]  ;;  %v216_v47 = vld [vmem:[#allocation8 + $0xd8] sm:$0xff] }
  0x48   :  { %402 = vmatpush.msrb.mxu1 %v254_v10  ;;  %408 = vmatpush.msrb.mxu2 %v247_v13  ;;  %v280_v48 = vld [vmem:[#allocation8 + $0x2d8] sm:$0xff]  ;;  %v211_v49 = vld [vmem:[#allocation8 + $0xb0] sm:$0xff] }
  0x49   :  { %447 = vmatpush.msra.mxu0 %v252_v11  ;;  %428 = vmatpush.msrb.mxu3 %v311_v14  ;;  %v275_v50 = vld [vmem:[#allocation8 + $0x2b0] sm:$0xff]  ;;  %v212_v51 = vld [vmem:[#allocation8 + $0xb8] sm:$0xff] }
  0x4a   :  { %467 = vmatpush.msra.mxu1 %v316_v12  ;;  %409 = vmatpush.msrb.mxu2 %v243_v17  ;;  %v276_v52 = vld [vmem:[#allocation8 + $0x2b8] sm:$0xff]  ;;  %v207_v53 = vld [vmem:[#allocation8 + $0x90] sm:$0xff] }
  0x4b   :  { %448 = vmatpush.msra.mxu0 %v248_v15  ;;  %429 = vmatpush.msrb.mxu3 %v307_v18  ;;  %v271_v54 = vld [vmem:[#allocation8 + $0x290] sm:$0xff]  ;;  %v208_v55 = vld [vmem:[#allocation8 + $0x98] sm:$0xff]  ;;  %v739_v18 = vld [vmem:[#allocation11 + $0x7c0] sm:$0xff] }
  0x4c   :  { %468 = vmatpush.msra.mxu1 %v312_v16  ;;  %410 = vmatpush.msrb.mxu2 %v239_v21  ;;  %v272_v56 = vld [vmem:[#allocation8 + $0x298] sm:$0xff]  ;;  %v203_v57 = vld [vmem:[#allocation8 + $0x70] sm:$0xff]  ;;  %v867_v21 = vld [vmem:[#allocation11 + $0xbc0] sm:$0xff] }
  0x4d   :  { %449 = vmatpush.msra.mxu0 %v244_v19  ;;  %430 = vmatpush.msrb.mxu3 %v303_v22  ;;  %v267_v58 = vld [vmem:[#allocation8 + $0x270] sm:$0xff]  ;;  %v204_v59 = vld [vmem:[#allocation8 + $0x78] sm:$0xff]  ;;  %v611_v19 = vld [vmem:[#allocation11 + $0x3c0] sm:$0xff] }
  0x4e   :  { %469 = vmatpush.msra.mxu1 %v308_v20  ;;  %411 = vmatpush.msrb.mxu2 %v235_v25  ;;  %v268_v60 = vld [vmem:[#allocation8 + $0x278] sm:$0xff]  ;;  %v199_v61 = vld [vmem:[#allocation8 + $0x50] sm:$0xff]  ;;  %v995_v20 = vld [vmem:[#allocation11 + $0xfc0] sm:$0xff] }
  0x4f   :  { %450 = vmatpush.msra.mxu0 %v240_v23  ;;  %431 = vmatpush.msrb.mxu3 %v299_v26  ;;  %v263_v62 = vld [vmem:[#allocation8 + $0x250] sm:$0xff]  ;;  %v200_v63 = vld [vmem:[#allocation8 + $0x58] sm:$0xff]  ;;  %v731_v22 = vld [vmem:[#allocation11 + $0x780] sm:$0xff] }
  0x50   :  { %470 = vmatpush.msra.mxu1 %v304_v24  ;;  %412 = vmatpush.msrb.mxu2 %v231_v29  ;;  %v264_v0 = vld [vmem:[#allocation8 + $0x258] sm:$0xff]  ;;  %v195_v1 = vld [vmem:[#allocation8 + $0x30] sm:$0xff]  ;;  %v603_v23 = vld [vmem:[#allocation11 + $0x380] sm:$0xff] }
  0x51   :  { %451 = vmatpush.msra.mxu0 %v236_v27  ;;  %432 = vmatpush.msrb.mxu3 %v295_v30  ;;  %v259_v2 = vld [vmem:[#allocation8 + $0x230] sm:$0xff]  ;;  %v196_v3 = vld [vmem:[#allocation8 + $0x38] sm:$0xff]  ;;  %v987_v24 = vld [vmem:[#allocation11 + $0xf80] sm:$0xff] }
  0x52   :  { %471 = vmatpush.msra.mxu1 %v300_v28  ;;  %413 = vmatpush.msrb.mxu2 %v227_v33  ;;  %v260_v4 = vld [vmem:[#allocation8 + $0x238] sm:$0xff]  ;;  %v191_v5 = vld [vmem:[#allocation8 + $0x10] sm:$0xff]  ;;  %v859_v25 = vld [vmem:[#allocation11 + $0xb80] sm:$0xff] }
  0x53   :  { %452 = vmatpush.msra.mxu0 %v232_v31  ;;  %433 = vmatpush.msrb.mxu3 %v291_v34  ;;  %v255_v6 = vld [vmem:[#allocation8 + $0x210] sm:$0xff]  ;;  %v192_v7 = vld [vmem:[#allocation8 + $0x18] sm:$0xff]  ;;  %v723_v26 = vld [vmem:[#allocation11 + $0x740] sm:$0xff] }
  0x54   :  { %472 = vmatpush.msra.mxu1 %v296_v32  ;;  %414 = vmatpush.msrb.mxu2 %v223_v37  ;;  %v256_v8 = vld [vmem:[#allocation8 + $0x218] sm:$0xff]  ;;  %v595_v27 = vld [vmem:[#allocation11 + $0x340] sm:$0xff] }
  0x55   :  { %453 = vmatpush.msra.mxu0 %v228_v35  ;;  %434 = vmatpush.msrb.mxu3 %v287_v38  ;;  %v137_v9 = vld [vmem:[#allocation7] sm:$0x3]  ;;  %v979_v28 = vld [vmem:[#allocation11 + $0xf40] sm:$0xff] }
  0x56   :  { %473 = vmatpush.msra.mxu1 %v292_v36  ;;  %415 = vmatpush.msrb.mxu2 %v219_v41  ;;  %v139_v10 = vperm.slane %v137_v9, 0  ;;  %v140_v11 = vperm.slane %v137_v9, 1  ;;  %v851_v29 = vld [vmem:[#allocation11 + $0xb40] sm:$0xff] }
  0x57   :  { %454 = vmatpush.msra.mxu0 %v224_v39  ;;  %435 = vmatpush.msrb.mxu3 %v283_v42  ;;  %v715_v30 = vld [vmem:[#allocation11 + $0x700] sm:$0xff] }
  0x58   :  { %474 = vmatpush.msra.mxu1 %v288_v40  ;;  %416 = vmatpush.msrb.mxu2 %v215_v45  ;;  %v587_v31 = vld [vmem:[#allocation11 + $0x300] sm:$0xff] }
  0x59   :  { %455 = vmatpush.msra.mxu0 %v220_v43  ;;  %436 = vmatpush.msrb.mxu3 %v279_v46  ;;  %v971_v32 = vld [vmem:[#allocation11 + $0xf00] sm:$0xff] }
  0x5a   :  { %475 = vmatpush.msra.mxu1 %v284_v44  ;;  %417 = vmatpush.msrb.mxu2 %v211_v49  ;;  %v843_v33 = vld [vmem:[#allocation11 + $0xb00] sm:$0xff] }
  0x5b   :  { %456 = vmatpush.msra.mxu0 %v216_v47  ;;  %437 = vmatpush.msrb.mxu3 %v275_v50  ;;  %v707_v34 = vld [vmem:[#allocation11 + $0x6c0] sm:$0xff] }
  0x5c   :  { %476 = vmatpush.msra.mxu1 %v280_v48  ;;  %418 = vmatpush.msrb.mxu2 %v207_v53  ;;  %v579_v35 = vld [vmem:[#allocation11 + $0x2c0] sm:$0xff] }
  0x5d   :  { %457 = vmatpush.msra.mxu0 %v212_v51  ;;  %438 = vmatpush.msrb.mxu3 %v271_v54  ;;  %v963_v36 = vld [vmem:[#allocation11 + $0xec0] sm:$0xff] }
  0x5e   :  { %477 = vmatpush.msra.mxu1 %v276_v52  ;;  %419 = vmatpush.msrb.mxu2 %v203_v57  ;;  %v835_v37 = vld [vmem:[#allocation11 + $0xac0] sm:$0xff] }
  0x5f   :  { %458 = vmatpush.msra.mxu0 %v208_v55  ;;  %439 = vmatpush.msrb.mxu3 %v267_v58  ;;  %v699_v38 = vld [vmem:[#allocation11 + $0x680] sm:$0xff] }
  0x60   :  { %478 = vmatpush.msra.mxu1 %v272_v56  ;;  %420 = vmatpush.msrb.mxu2 %v199_v61  ;;  %v571_v39 = vld [vmem:[#allocation11 + $0x280] sm:$0xff] }
  0x61   :  { %459 = vmatpush.msra.mxu0 %v204_v59  ;;  %440 = vmatpush.msrb.mxu3 %v263_v62  ;;  %v955_v40 = vld [vmem:[#allocation11 + $0xe80] sm:$0xff] }
  0x62   :  { %479 = vmatpush.msra.mxu1 %v268_v60  ;;  %421 = vmatpush.msrb.mxu2 %v195_v1  ;;  %v827_v41 = vld [vmem:[#allocation11 + $0xa80] sm:$0xff] }
  0x63   :  { %460 = vmatpush.msra.mxu0 %v200_v63  ;;  %441 = vmatpush.msrb.mxu3 %v259_v2  ;;  %v691_v42 = vld [vmem:[#allocation11 + $0x640] sm:$0xff] }
  0x64   :  { %480 = vmatpush.msra.mxu1 %v264_v0  ;;  %422 = vmatpush.msrb.mxu2 %v191_v5  ;;  %v563_v43 = vld [vmem:[#allocation11 + $0x240] sm:$0xff] }
  0x65   :  { %461 = vmatpush.msra.mxu0 %v196_v3  ;;  %442 = vmatpush.msrb.mxu3 %v255_v6  ;;  %v947_v44 = vld [vmem:[#allocation11 + $0xe40] sm:$0xff] }
  0x66   :  { %481 = vmatpush.msra.mxu1 %v260_v4  ;;  %v819_v45 = vld [vmem:[#allocation11 + $0xa40] sm:$0xff] }
  0x67   :  { %462 = vmatpush.msra.mxu0 %v192_v7  ;;  %v683_v46 = vld [vmem:[#allocation11 + $0x600] sm:$0xff] }
  0x68   :  { %482 = vmatpush.msra.mxu1 %v256_v8  ;;  %v555_v47 = vld [vmem:[#allocation11 + $0x200] sm:$0xff] }
  0x69   :  { %v939_v48 = vld [vmem:[#allocation11 + $0xe00] sm:$0xff] }
  0x6a   :  { %v811_v49 = vld [vmem:[#allocation11 + $0xa00] sm:$0xff] }
  0x6b   :  { %v675_v50 = vld [vmem:[#allocation11 + $0x5c0] sm:$0xff] }
  0x6c   :  { %v547_v51 = vld [vmem:[#allocation11 + $0x1c0] sm:$0xff] }
  0x6d   :  { %v931_v52 = vld [vmem:[#allocation11 + $0xdc0] sm:$0xff] }
  0x6e   :  { %v803_v53 = vld [vmem:[#allocation11 + $0x9c0] sm:$0xff] }
  0x6f   :  { %v667_v54 = vld [vmem:[#allocation11 + $0x580] sm:$0xff] }
  0x70   :  { %v539_v55 = vld [vmem:[#allocation11 + $0x180] sm:$0xff] }
  0x71   :  { %v923_v56 = vld [vmem:[#allocation11 + $0xd80] sm:$0xff] }
  0x72   :  { %v795_v57 = vld [vmem:[#allocation11 + $0x980] sm:$0xff] }
  0x73   :  { %v659_v58 = vld [vmem:[#allocation11 + $0x540] sm:$0xff] }
  0x74   :  { %v531_v59 = vld [vmem:[#allocation11 + $0x140] sm:$0xff] }
  0x75   :  { %v915_v60 = vld [vmem:[#allocation11 + $0xd40] sm:$0xff] }
  0x76   :  { %v787_v61 = vld [vmem:[#allocation11 + $0x940] sm:$0xff] }
  0x77   :  { %v651_v62 = vld [vmem:[#allocation11 + $0x500] sm:$0xff] }
  0x78   :  { %v523_v63 = vld [vmem:[#allocation11 + $0x100] sm:$0xff] }
  0x79   :  { %v907_v0 = vld [vmem:[#allocation11 + $0xd00] sm:$0xff] }
  0x7a   :  { %v779_v1 = vld [vmem:[#allocation11 + $0x900] sm:$0xff] }
  0x7b   :  { %v643_v2 = vld [vmem:[#allocation11 + $0x4c0] sm:$0xff] }
  0x7c   :  { %v515_v3 = vld [vmem:[#allocation11 + $0xc0] sm:$0xff] }
  0x7d   :  { %v899_v4 = vld [vmem:[#allocation11 + $0xcc0] sm:$0xff] }
  0x7e   :  { %v771_v5 = vld [vmem:[#allocation11 + $0x8c0] sm:$0xff] }
  0x7f   :  { %v635_v6 = vld [vmem:[#allocation11 + $0x480] sm:$0xff] }
  0x80   :  { %v507_v7 = vld [vmem:[#allocation11 + $0x80] sm:$0xff] }
  0x81   :  { %v891_v8 = vld [vmem:[#allocation11 + $0xc80] sm:$0xff] }
  0x82   :  { %v763_v9 = vld [vmem:[#allocation11 + $0x880] sm:$0xff] }
  0xa5   :  { %v164_v12 = vpop.f32.mrf.mxu0 }
  0xa6   :  { %v184_v13 = vpop.f32.mrf.mxu1  ;;  %v165_v14 = vadd.f32 %v164_v12, %v139_v10  ;;  %v627_v10 = vld [vmem:[#allocation11 + $0x440] sm:$0xff] }
  0xa7   :  { %v185_v15 = vadd.f32 %v184_v13, %v140_v11  ;;  %v499_v11 = vld [vmem:[#allocation11 + $0x40] sm:$0xff] }
  0xa8   :  { %v187_v16 = vmax.f32 %v165_v14, 0.0  ;;  %v883_v12 = vld [vmem:[#allocation11 + $0xc40] sm:$0xff] }
  0xa9   :  { %v188_v17 = vmax.f32 %v185_v15, 0.0  ;;  %v755_v13 = vld [vmem:[#allocation11 + $0x840] sm:$0xff] }
  0xaa   :  { %343 = vmatmul.f32.vlgmr.msra.gmra.mxu2 %v187_v16  ;;  %383 = vmatmul.f32.vlgmr.msrb.gmra.mxu0 %v187_v16  ;;  %v619_v14 = vld [vmem:[#allocation11 + $0x400] sm:$0xff] }
  0xab   :  { %363 = vmatmul.f32.vlgmr.msra.gmra.mxu3 %v188_v17  ;;  %403 = vmatmul.f32.vlgmr.msrb.gmra.mxu1 %v188_v17  ;;  %v491_v15 = vld [vmem:[#allocation11] sm:$0xff] }
  0xac   :  { %1041 = vmatpush.msra.mxu3 %v739_v18  ;;  %1021 = vmatpush.msra.mxu2 %v611_v19  ;;  %v875_v18 = vld [vmem:[#allocation11 + $0xc00] sm:$0xff] }
  0xad   :  { %1081 = vmatpush.msrb.mxu1 %v995_v20  ;;  %1061 = vmatpush.msrb.mxu0 %v867_v21  ;;  %v747_v19 = vld [vmem:[#allocation11 + $0x800] sm:$0xff]  ;;  %v732_v20 = vld [vmem:[#allocation11 + $0x788] sm:$0xff] }
  0xae   :  { %1042 = vmatpush.msra.mxu3 %v731_v22  ;;  %1022 = vmatpush.msra.mxu2 %v603_v23  ;;  %v604_v21 = vld [vmem:[#allocation11 + $0x388] sm:$0xff] }
  0xaf   :  { %1082 = vmatpush.msrb.mxu1 %v987_v24  ;;  %1062 = vmatpush.msrb.mxu0 %v859_v25  ;;  %v996_v22 = vld [vmem:[#allocation11 + $0xfc8] sm:$0xff] }
  0xb0   :  { %1043 = vmatpush.msra.mxu3 %v723_v26  ;;  %1023 = vmatpush.msra.mxu2 %v595_v27  ;;  %v868_v23 = vld [vmem:[#allocation11 + $0xbc8] sm:$0xff] }
  0xb1   :  { %1083 = vmatpush.msrb.mxu1 %v979_v28  ;;  %1063 = vmatpush.msrb.mxu0 %v851_v29  ;;  %v724_v24 = vld [vmem:[#allocation11 + $0x748] sm:$0xff] }
  0xb2   :  { %423 = vmatmul.f32.vlgmr.msrb.gmra.mxu2 %v187_v16  ;;  %463 = vmatmul.f32.vlgmr.msra.gmra.mxu0 %v187_v16  ;;  %v740_v16 = vld [vmem:[#allocation11 + $0x7c8] sm:$0xff] }
  0xb3   :  { %443 = vmatmul.f32.vlgmr.msrb.gmra.mxu3 %v188_v17  ;;  %483 = vmatmul.f32.vlgmr.msra.gmra.mxu1 %v188_v17  ;;  %v612_v17 = vld [vmem:[#allocation11 + $0x3c8] sm:$0xff] }
  0xb4   :  { %1044 = vmatpush.msra.mxu3 %v715_v30  ;;  %1024 = vmatpush.msra.mxu2 %v587_v31  ;;  %v596_v25 = vld [vmem:[#allocation11 + $0x348] sm:$0xff] }
  0xb5   :  { %1084 = vmatpush.msrb.mxu1 %v971_v32  ;;  %1064 = vmatpush.msrb.mxu0 %v843_v33  ;;  %v988_v26 = vld [vmem:[#allocation11 + $0xf88] sm:$0xff] }
  0xb6   :  { %1045 = vmatpush.msra.mxu3 %v707_v34  ;;  %1025 = vmatpush.msra.mxu2 %v579_v35  ;;  %v860_v27 = vld [vmem:[#allocation11 + $0xb88] sm:$0xff] }
  0xb7   :  { %1085 = vmatpush.msrb.mxu1 %v963_v36  ;;  %1065 = vmatpush.msrb.mxu0 %v835_v37  ;;  %v716_v28 = vld [vmem:[#allocation11 + $0x708] sm:$0xff] }
  0xb8   :  { %1046 = vmatpush.msra.mxu3 %v699_v38  ;;  %1026 = vmatpush.msra.mxu2 %v571_v39  ;;  %v588_v29 = vld [vmem:[#allocation11 + $0x308] sm:$0xff] }
  0xb9   :  { %1086 = vmatpush.msrb.mxu1 %v955_v40  ;;  %1066 = vmatpush.msrb.mxu0 %v827_v41  ;;  %v980_v30 = vld [vmem:[#allocation11 + $0xf48] sm:$0xff] }
  0xba   :  { %1047 = vmatpush.msra.mxu3 %v691_v42  ;;  %1027 = vmatpush.msra.mxu2 %v563_v43  ;;  %v852_v31 = vld [vmem:[#allocation11 + $0xb48] sm:$0xff] }
  0xbb   :  { %1087 = vmatpush.msrb.mxu1 %v947_v44  ;;  %1067 = vmatpush.msrb.mxu0 %v819_v45  ;;  %v708_v32 = vld [vmem:[#allocation11 + $0x6c8] sm:$0xff] }
  0xbc   :  { %1048 = vmatpush.msra.mxu3 %v683_v46  ;;  %1028 = vmatpush.msra.mxu2 %v555_v47  ;;  %v580_v33 = vld [vmem:[#allocation11 + $0x2c8] sm:$0xff] }
  0xbd   :  { %1088 = vmatpush.msrb.mxu1 %v939_v48  ;;  %1068 = vmatpush.msrb.mxu0 %v811_v49  ;;  %v972_v34 = vld [vmem:[#allocation11 + $0xf08] sm:$0xff] }
  0xbe   :  { %1049 = vmatpush.msra.mxu3 %v675_v50  ;;  %1029 = vmatpush.msra.mxu2 %v547_v51  ;;  %v844_v35 = vld [vmem:[#allocation11 + $0xb08] sm:$0xff] }
  0xbf   :  { %1089 = vmatpush.msrb.mxu1 %v931_v52  ;;  %1069 = vmatpush.msrb.mxu0 %v803_v53  ;;  %v700_v36 = vld [vmem:[#allocation11 + $0x688] sm:$0xff] }
  0xc0   :  { %1050 = vmatpush.msra.mxu3 %v667_v54  ;;  %1030 = vmatpush.msra.mxu2 %v539_v55  ;;  %v572_v37 = vld [vmem:[#allocation11 + $0x288] sm:$0xff] }
  0xc1   :  { %1090 = vmatpush.msrb.mxu1 %v923_v56  ;;  %1070 = vmatpush.msrb.mxu0 %v795_v57  ;;  %v964_v38 = vld [vmem:[#allocation11 + $0xec8] sm:$0xff] }
  0xc2   :  { %1051 = vmatpush.msra.mxu3 %v659_v58  ;;  %1031 = vmatpush.msra.mxu2 %v531_v59  ;;  %v836_v39 = vld [vmem:[#allocation11 + $0xac8] sm:$0xff] }
  0xc3   :  { %1091 = vmatpush.msrb.mxu1 %v915_v60  ;;  %1071 = vmatpush.msrb.mxu0 %v787_v61  ;;  %v692_v40 = vld [vmem:[#allocation11 + $0x648] sm:$0xff] }
  0xc4   :  { %1052 = vmatpush.msra.mxu3 %v651_v62  ;;  %1032 = vmatpush.msra.mxu2 %v523_v63  ;;  %v564_v41 = vld [vmem:[#allocation11 + $0x248] sm:$0xff] }
  0xc5   :  { %1092 = vmatpush.msrb.mxu1 %v907_v0  ;;  %1072 = vmatpush.msrb.mxu0 %v779_v1  ;;  %v956_v42 = vld [vmem:[#allocation11 + $0xe88] sm:$0xff] }
  0xc6   :  { %1053 = vmatpush.msra.mxu3 %v643_v2  ;;  %1033 = vmatpush.msra.mxu2 %v515_v3  ;;  %v684_v43 = vld [vmem:[#allocation11 + $0x608] sm:$0xff] }
  0xc7   :  { %1093 = vmatpush.msrb.mxu1 %v899_v4  ;;  %1073 = vmatpush.msrb.mxu0 %v771_v5  ;;  %v556_v44 = vld [vmem:[#allocation11 + $0x208] sm:$0xff] }
  0xc8   :  { %1054 = vmatpush.msra.mxu3 %v635_v6  ;;  %1034 = vmatpush.msra.mxu2 %v507_v7  ;;  %v948_v45 = vld [vmem:[#allocation11 + $0xe48] sm:$0xff] }
  0xc9   :  { %1094 = vmatpush.msrb.mxu1 %v891_v8  ;;  %1074 = vmatpush.msrb.mxu0 %v763_v9  ;;  %v676_v46 = vld [vmem:[#allocation11 + $0x5c8] sm:$0xff] }
  0xca   :  { %1055 = vmatpush.msra.mxu3 %v627_v10  ;;  %1035 = vmatpush.msra.mxu2 %v499_v11  ;;  %v548_v47 = vld [vmem:[#allocation11 + $0x1c8] sm:$0xff] }
  0xcb   :  { %1095 = vmatpush.msrb.mxu1 %v883_v12  ;;  %1075 = vmatpush.msrb.mxu0 %v755_v13  ;;  %v940_v48 = vld [vmem:[#allocation11 + $0xe08] sm:$0xff] }
  0xcc   :  { %1056 = vmatpush.msra.mxu3 %v619_v14  ;;  %1036 = vmatpush.msra.mxu2 %v491_v15  ;;  %v668_v49 = vld [vmem:[#allocation11 + $0x588] sm:$0xff] }
  0xcd   :  { %1096 = vmatpush.msrb.mxu1 %v875_v18  ;;  %1076 = vmatpush.msrb.mxu0 %v747_v19  ;;  %v660_v50 = vld [vmem:[#allocation11 + $0x548] sm:$0xff]  ;;  %v317_v18 = vld [vmem:[#allocation10] sm:$0xf] }
  0xce   :  { %1121 = vmatpush.msrb.mxu3 %v740_v16  ;;  %1101 = vmatpush.msrb.mxu2 %v612_v17  ;;  %v652_v51 = vld [vmem:[#allocation11 + $0x508] sm:$0xff]  ;;  %v320_v19 = vperm.slane %v317_v18, 1 }
  0xcf   :  { %1161 = vmatpush.msra.mxu1 %v996_v22  ;;  %1141 = vmatpush.msra.mxu0 %v868_v23  ;;  %v540_v52 = vld [vmem:[#allocation11 + $0x188] sm:$0xff]  ;;  %v319_v23 = vperm.slane %v317_v18, 0 }
  0xd0   :  { %1122 = vmatpush.msrb.mxu3 %v732_v20  ;;  %1102 = vmatpush.msrb.mxu2 %v604_v21  ;;  %v644_v53 = vld [vmem:[#allocation11 + $0x4c8] sm:$0xff] }
  0xd1   :  { %1162 = vmatpush.msra.mxu1 %v988_v26  ;;  %1142 = vmatpush.msra.mxu0 %v860_v27  ;;  %v828_v54 = vld [vmem:[#allocation11 + $0xa88] sm:$0xff] }
  0xd2   :  { %1123 = vmatpush.msrb.mxu3 %v724_v24  ;;  %1103 = vmatpush.msrb.mxu2 %v596_v25  ;;  %v932_v55 = vld [vmem:[#allocation11 + $0xdc8] sm:$0xff] }
  0xd3   :  { %1163 = vmatpush.msra.mxu1 %v980_v30  ;;  %1143 = vmatpush.msra.mxu0 %v852_v31  ;;  %v532_v56 = vld [vmem:[#allocation11 + $0x148] sm:$0xff]  ;;  %v733_v31 = vld [vmem:[#allocation11 + $0x790] sm:$0xff] }
  0xd4   :  { %1124 = vmatpush.msrb.mxu3 %v716_v28  ;;  %1104 = vmatpush.msrb.mxu2 %v588_v29  ;;  %v636_v57 = vld [vmem:[#allocation11 + $0x488] sm:$0xff]  ;;  %v741_v28 = vld [vmem:[#allocation11 + $0x7d0] sm:$0xff]  ;;  %v322_v29 = vperm.slane %v317_v18, 3 }
  0xd5   :  { %1164 = vmatpush.msra.mxu1 %v972_v34  ;;  %1144 = vmatpush.msra.mxu0 %v844_v35  ;;  %v820_v58 = vld [vmem:[#allocation11 + $0xa48] sm:$0xff]  ;;  %v725_v35 = vld [vmem:[#allocation11 + $0x750] sm:$0xff] }
  0xd6   :  { %1125 = vmatpush.msrb.mxu3 %v708_v32  ;;  %1105 = vmatpush.msrb.mxu2 %v580_v33  ;;  %v924_v59 = vld [vmem:[#allocation11 + $0xd88] sm:$0xff] }
  0xd7   :  { %1165 = vmatpush.msra.mxu1 %v964_v38  ;;  %1145 = vmatpush.msra.mxu0 %v836_v39  ;;  %v524_v60 = vld [vmem:[#allocation11 + $0x108] sm:$0xff]  ;;  %v613_v38 = vld [vmem:[#allocation11 + $0x3d0] sm:$0xff]  ;;  %v321_v39 = vperm.slane %v317_v18, 2 }
  0xd8   :  { %1126 = vmatpush.msrb.mxu3 %v700_v36  ;;  %1106 = vmatpush.msrb.mxu2 %v572_v37  ;;  %v628_v61 = vld [vmem:[#allocation11 + $0x448] sm:$0xff]  ;;  %v637_v18 = vld [vmem:[#allocation11 + $0x490] sm:$0xff] }
  0xd9   :  { %1166 = vmatpush.msra.mxu1 %v956_v42  ;;  %1146 = vmatpush.msra.mxu0 %v828_v54  ;;  %v812_v62 = vld [vmem:[#allocation11 + $0xa08] sm:$0xff]  ;;  %v693_v54 = vld [vmem:[#allocation11 + $0x650] sm:$0xff] }
  0xda   :  { %1127 = vmatpush.msrb.mxu3 %v692_v40  ;;  %1107 = vmatpush.msrb.mxu2 %v564_v41  ;;  %v916_v63 = vld [vmem:[#allocation11 + $0xd48] sm:$0xff]  ;;  %v717_v41 = vld [vmem:[#allocation11 + $0x710] sm:$0xff] }
  0xdb   :  { %1167 = vmatpush.msra.mxu1 %v948_v45  ;;  %1147 = vmatpush.msra.mxu0 %v820_v58  ;;  %v516_v0 = vld [vmem:[#allocation11 + $0xc8] sm:$0xff]  ;;  %v709_v45 = vld [vmem:[#allocation11 + $0x6d0] sm:$0xff] }
  0xdc   :  { %1128 = vmatpush.msrb.mxu3 %v684_v43  ;;  %1108 = vmatpush.msrb.mxu2 %v556_v44  ;;  %v620_v1 = vld [vmem:[#allocation11 + $0x408] sm:$0xff]  ;;  %v605_v44 = vld [vmem:[#allocation11 + $0x390] sm:$0xff] }
  0xdd   :  { %1168 = vmatpush.msra.mxu1 %v940_v48  ;;  %1148 = vmatpush.msra.mxu0 %v812_v62  ;;  %v804_v2 = vld [vmem:[#allocation11 + $0x9c8] sm:$0xff]  ;;  %v581_v58 = vld [vmem:[#allocation11 + $0x2d0] sm:$0xff] }
  0xde   :  { %1129 = vmatpush.msrb.mxu3 %v676_v46  ;;  %1109 = vmatpush.msrb.mxu2 %v548_v47  ;;  %v908_v3 = vld [vmem:[#allocation11 + $0xd08] sm:$0xff]  ;;  %v997_v47 = vld [vmem:[#allocation11 + $0xfd0] sm:$0xff] }
  0xdf   :  { %1169 = vmatpush.msra.mxu1 %v932_v55  ;;  %1149 = vmatpush.msra.mxu0 %v804_v2  ;;  %v508_v4 = vld [vmem:[#allocation11 + $0x88] sm:$0xff]  ;;  %v573_v62 = vld [vmem:[#allocation11 + $0x290] sm:$0xff] }
  0xe0   :  { %1130 = vmatpush.msrb.mxu3 %v668_v49  ;;  %1110 = vmatpush.msrb.mxu2 %v540_v52  ;;  %v796_v5 = vld [vmem:[#allocation11 + $0x988] sm:$0xff]  ;;  %v597_v49 = vld [vmem:[#allocation11 + $0x350] sm:$0xff] }
  0xe1   :  { %1170 = vmatpush.msra.mxu1 %v924_v59  ;;  %v900_v6 = vld [vmem:[#allocation11 + $0xcc8] sm:$0xff]  ;;  %1150 = vmatpush.msra.mxu0 %v796_v5  ;;  %v989_v52 = vld [vmem:[#allocation11 + $0xf90] sm:$0xff] }
  0xe2   :  { %1131 = vmatpush.msrb.mxu3 %v660_v50  ;;  %1111 = vmatpush.msrb.mxu2 %v532_v56  ;;  %v500_v7 = vld [vmem:[#allocation11 + $0x48] sm:$0xff]  ;;  %v701_v50 = vld [vmem:[#allocation11 + $0x690] sm:$0xff] }
  0xe3   :  { %1171 = vmatpush.msra.mxu1 %v916_v63  ;;  %v788_v8 = vld [vmem:[#allocation11 + $0x948] sm:$0xff]  ;;  %v981_v56 = vld [vmem:[#allocation11 + $0xf50] sm:$0xff] }
  0xe4   :  { %1132 = vmatpush.msrb.mxu3 %v652_v51  ;;  %1112 = vmatpush.msrb.mxu2 %v524_v60  ;;  %v892_v9 = vld [vmem:[#allocation11 + $0xc88] sm:$0xff]  ;;  %v869_v59 = vld [vmem:[#allocation11 + $0xbd0] sm:$0xff] }
  0xe5   :  { %1172 = vmatpush.msra.mxu1 %v908_v3  ;;  %1151 = vmatpush.msra.mxu0 %v788_v8  ;;  %v492_v10 = vld [vmem:[#allocation11 + $0x8] sm:$0xff]  ;;  %v973_v60 = vld [vmem:[#allocation11 + $0xf10] sm:$0xff] }
  0xe6   :  { %1133 = vmatpush.msrb.mxu3 %v644_v53  ;;  %1113 = vmatpush.msrb.mxu2 %v516_v0  ;;  %v780_v11 = vld [vmem:[#allocation11 + $0x908] sm:$0xff]  ;;  %v589_v53 = vld [vmem:[#allocation11 + $0x310] sm:$0xff] }
  0xe7   :  { %1173 = vmatpush.msra.mxu1 %v900_v6  ;;  %v884_v12 = vld [vmem:[#allocation11 + $0xc48] sm:$0xff]  ;;  %1152 = vmatpush.msra.mxu0 %v780_v11  ;;  %v861_v63 = vld [vmem:[#allocation11 + $0xb90] sm:$0xff] }
  0xe8   :  { %1134 = vmatpush.msrb.mxu3 %v636_v57  ;;  %1114 = vmatpush.msrb.mxu2 %v508_v4  ;;  %v772_v13 = vld [vmem:[#allocation11 + $0x8c8] sm:$0xff]  ;;  %v685_v57 = vld [vmem:[#allocation11 + $0x610] sm:$0xff] }
  0xe9   :  { %1174 = vmatpush.msra.mxu1 %v892_v9  ;;  %v876_v14 = vld [vmem:[#allocation11 + $0xc08] sm:$0xff]  ;;  %1153 = vmatpush.msra.mxu0 %v772_v13  ;;  %v965_v0 = vld [vmem:[#allocation11 + $0xed0] sm:$0xff] }
  0xea   :  { %1135 = vmatpush.msrb.mxu3 %v628_v61  ;;  %1115 = vmatpush.msrb.mxu2 %v500_v7  ;;  %v764_v15 = vld [vmem:[#allocation11 + $0x888] sm:$0xff]  ;;  %v677_v61 = vld [vmem:[#allocation11 + $0x5d0] sm:$0xff] }
  0xeb   :  { %1175 = vmatpush.msra.mxu1 %v884_v12  ;;  %1154 = vmatpush.msra.mxu0 %v764_v15  ;;  %v756_v16 = vld [vmem:[#allocation11 + $0x848] sm:$0xff]  ;;  %v669_v2 = vld [vmem:[#allocation11 + $0x590] sm:$0xff] }
  0xec   :  { %1136 = vmatpush.msrb.mxu3 %v620_v1  ;;  %1116 = vmatpush.msrb.mxu2 %v492_v10  ;;  %v748_v17 = vld [vmem:[#allocation11 + $0x808] sm:$0xff]  ;;  %v565_v1 = vld [vmem:[#allocation11 + $0x250] sm:$0xff] }
  0xed   :  { %1176 = vmatpush.msra.mxu1 %v876_v14  ;;  %1155 = vmatpush.msra.mxu0 %v756_v16  ;;  %v853_v3 = vld [vmem:[#allocation11 + $0xb50] sm:$0xff] }
  0xee   :  { %v957_v4 = vld [vmem:[#allocation11 + $0xe90] sm:$0xff] }
  0xef   :  { %1156 = vmatpush.msra.mxu0 %v748_v17  ;;  %v557_v5 = vld [vmem:[#allocation11 + $0x210] sm:$0xff] }
  0xf0   :  { %v661_v6 = vld [vmem:[#allocation11 + $0x550] sm:$0xff] }
  0xf1   :  { %v845_v7 = vld [vmem:[#allocation11 + $0xb10] sm:$0xff] }
  0xf2   :  { %v949_v8 = vld [vmem:[#allocation11 + $0xe50] sm:$0xff] }
  0xf3   :  { %v549_v9 = vld [vmem:[#allocation11 + $0x1d0] sm:$0xff] }
  0xf4   :  { %v653_v10 = vld [vmem:[#allocation11 + $0x510] sm:$0xff] }
  0xf5   :  { %v837_v11 = vld [vmem:[#allocation11 + $0xad0] sm:$0xff] }
  0xf6   :  { %v941_v12 = vld [vmem:[#allocation11 + $0xe10] sm:$0xff] }
  0xf7   :  { %v541_v13 = vld [vmem:[#allocation11 + $0x190] sm:$0xff] }
  0xf8   :  { %v645_v14 = vld [vmem:[#allocation11 + $0x4d0] sm:$0xff] }
  0xf9   :  { %v829_v15 = vld [vmem:[#allocation11 + $0xa90] sm:$0xff] }
  0xfa   :  { %v933_v16 = vld [vmem:[#allocation11 + $0xdd0] sm:$0xff] }
  0xfb   :  { %v533_v17 = vld [vmem:[#allocation11 + $0x150] sm:$0xff] }
 0x127   :  { %v384_v20 = vpop.f32.mrf.mxu0 }
 0x128   :  { %v404_v21 = vpop.f32.mrf.mxu1  ;;  %v385_v22 = vadd.f32 %v384_v20, %v320_v19  ;;  %v821_v19 = vld [vmem:[#allocation11 + $0xa50] sm:$0xff] }
 0x129   :  { %v925_v20 = vld [vmem:[#allocation11 + $0xd90] sm:$0xff] }
 0x12a   :  { %v405_v24 = vadd.f32 %v404_v21, %v385_v22  ;;  %v525_v21 = vld [vmem:[#allocation11 + $0x110] sm:$0xff] }
 0x12b   :  { %v629_v22 = vld [vmem:[#allocation11 + $0x450] sm:$0xff] }
 0x12c   :  { %v2009_v25 = vmax.f32 %v405_v24, 0.0  ;;  %v917_v24 = vld [vmem:[#allocation11 + $0xd50] sm:$0xff] }
 0x12d   :  { %v344_v26 = vpop.f32.mrf.mxu2 }
 0x12e   :  { %v364_v27 = vpop.f32.mrf.mxu3  ;;  %v345_v30 = vadd.f32 %v344_v26, %v319_v23  ;;  %1057 = vmatmul.f32.vlgmr.msra.gmra.mxu3 %v2009_v25  ;;  %v813_v23 = vld [vmem:[#allocation11 + $0xa10] sm:$0xff] }
 0x12f   :  { %1201 = vmatpush.msra.mxu3 %v741_v28  ;;  %v464_v33 = vpop.f32.mrf.mxu0  ;;  %v517_v26 = vld [vmem:[#allocation11 + $0xd0] sm:$0xff] }
 0x130   :  { %v365_v32 = vadd.f32 %v364_v27, %v345_v30  ;;  %v465_v34 = vadd.f32 %v464_v33, %v322_v29  ;;  %v484_v37 = vpop.f32.mrf.mxu1  ;;  %v621_v27 = vld [vmem:[#allocation11 + $0x410] sm:$0xff]  ;;  %v742_v30 = vld [vmem:[#allocation11 + $0x7d8] sm:$0xff] }
 0x131   :  { %1202 = vmatpush.msra.mxu3 %v733_v31  ;;  %v805_v28 = vld [vmem:[#allocation11 + $0x9d0] sm:$0xff] }
 0x132   :  { %v2012_v36 = vmax.f32 %v365_v32, 0.0  ;;  %v485_v40 = vadd.f32 %v484_v37, %v465_v34  ;;  %v909_v29 = vld [vmem:[#allocation11 + $0xd10] sm:$0xff]  ;;  %v734_v34 = vld [vmem:[#allocation11 + $0x798] sm:$0xff] }
 0x133   :  { %1203 = vmatpush.msra.mxu3 %v725_v35  ;;  %v509_v31 = vld [vmem:[#allocation11 + $0x90] sm:$0xff] }
 0x134   :  { %1037 = vmatmul.f32.vlgmr.msra.gmra.mxu2 %v2012_v36  ;;  %v2015_v42 = vmax.f32 %v485_v40, 0.0  ;;  %v797_v32 = vld [vmem:[#allocation11 + $0x990] sm:$0xff] }
 0x135   :  { %1181 = vmatpush.msra.mxu2 %v613_v38  ;;  %v424_v43 = vpop.f32.mrf.mxu2  ;;  %1204 = vmatpush.msra.mxu3 %v717_v41  ;;  %v901_v33 = vld [vmem:[#allocation11 + $0xcd0] sm:$0xff] }
 0x136   :  { %v425_v46 = vadd.f32 %v424_v43, %v321_v39  ;;  %v444_v48 = vpop.f32.mrf.mxu3  ;;  %1097 = vmatmul.f32.vlgmr.msrb.gmra.mxu1 %v2015_v42  ;;  %1137 = vmatmul.f32.vlgmr.msrb.gmra.mxu3 %v2009_v25  ;;  %v501_v35 = vld [vmem:[#allocation11 + $0x50] sm:$0xff]  ;;  %v726_v39 = vld [vmem:[#allocation11 + $0x758] sm:$0xff] }
 0x137   :  { %1182 = vmatpush.msra.mxu2 %v605_v44  ;;  %1205 = vmatpush.msra.mxu3 %v709_v45  ;;  %v789_v37 = vld [vmem:[#allocation11 + $0x950] sm:$0xff]  ;;  %v718_v44 = vld [vmem:[#allocation11 + $0x718] sm:$0xff] }
 0x138   :  { %v445_v51 = vadd.f32 %v444_v48, %v425_v46  ;;  %1241 = vmatpush.msrb.mxu1 %v997_v47  ;;  %v893_v38 = vld [vmem:[#allocation11 + $0xc90] sm:$0xff]  ;;  %v614_v45 = vld [vmem:[#allocation11 + $0x3d8] sm:$0xff] }
 0x139   :  { %1183 = vmatpush.msra.mxu2 %v597_v49  ;;  %1206 = vmatpush.msra.mxu3 %v701_v50  ;;  %v493_v40 = vld [vmem:[#allocation11 + $0x10] sm:$0xff]  ;;  %v710_v48 = vld [vmem:[#allocation11 + $0x6d8] sm:$0xff] }
 0x13a   :  { %v2019_v55 = vmax.f32 %v445_v51, 0.0  ;;  %1242 = vmatpush.msrb.mxu1 %v989_v52  ;;  %v781_v41 = vld [vmem:[#allocation11 + $0x910] sm:$0xff]  ;;  %v606_v49 = vld [vmem:[#allocation11 + $0x398] sm:$0xff] }
 0x13b   :  { %1184 = vmatpush.msra.mxu2 %v589_v53  ;;  %1207 = vmatpush.msra.mxu3 %v693_v54  ;;  %v885_v43 = vld [vmem:[#allocation11 + $0xc50] sm:$0xff]  ;;  %v998_v50 = vld [vmem:[#allocation11 + $0xfd8] sm:$0xff] }
 0x13c   :  { %1243 = vmatpush.msrb.mxu1 %v981_v56  ;;  %1077 = vmatmul.f32.vlgmr.msrb.gmra.mxu0 %v2019_v55  ;;  %v773_v46 = vld [vmem:[#allocation11 + $0x8d0] sm:$0xff]  ;;  %v598_v52 = vld [vmem:[#allocation11 + $0x358] sm:$0xff] }
 0x13d   :  { %1117 = vmatmul.f32.vlgmr.msrb.gmra.mxu2 %v2012_v36  ;;  %1208 = vmatpush.msra.mxu3 %v685_v57  ;;  %v877_v47 = vld [vmem:[#allocation11 + $0xc10] sm:$0xff]  ;;  %v702_v53 = vld [vmem:[#allocation11 + $0x698] sm:$0xff] }
 0x13e   :  { %1185 = vmatpush.msra.mxu2 %v581_v58  ;;  %1221 = vmatpush.msrb.mxu0 %v869_v59  ;;  %v765_v51 = vld [vmem:[#allocation11 + $0x890] sm:$0xff]  ;;  %v990_v54 = vld [vmem:[#allocation11 + $0xf98] sm:$0xff] }
 0x13f   :  { %1244 = vmatpush.msrb.mxu1 %v973_v60  ;;  %1209 = vmatpush.msra.mxu3 %v677_v61  ;;  %v757_v56 = vld [vmem:[#allocation11 + $0x850] sm:$0xff]  ;;  %v590_v57 = vld [vmem:[#allocation11 + $0x318] sm:$0xff] }
 0x140   :  { %1177 = vmatmul.f32.vlgmr.msra.gmra.mxu1 %v2015_v42  ;;  %1186 = vmatpush.msra.mxu2 %v573_v62  ;;  %v694_v58 = vld [vmem:[#allocation11 + $0x658] sm:$0xff]  ;;  %v749_v60 = vld [vmem:[#allocation11 + $0x810] sm:$0xff] }
 0x141   :  { %1222 = vmatpush.msrb.mxu0 %v861_v63  ;;  %1245 = vmatpush.msrb.mxu1 %v965_v0  ;;  %v982_v59 = vld [vmem:[#allocation11 + $0xf58] sm:$0xff] }
 0x142   :  { %1187 = vmatpush.msra.mxu2 %v565_v1  ;;  %1210 = vmatpush.msra.mxu3 %v669_v2  ;;  %v582_v61 = vld [vmem:[#allocation11 + $0x2d8] sm:$0xff] }
 0x143   :  { %1223 = vmatpush.msrb.mxu0 %v853_v3  ;;  %1246 = vmatpush.msrb.mxu1 %v957_v4  ;;  %v686_v62 = vld [vmem:[#allocation11 + $0x618] sm:$0xff] }
 0x144   :  { %1188 = vmatpush.msra.mxu2 %v557_v5  ;;  %1211 = vmatpush.msra.mxu3 %v661_v6  ;;  %v870_v63 = vld [vmem:[#allocation11 + $0xbd8] sm:$0xff] }
 0x145   :  { %1224 = vmatpush.msrb.mxu0 %v845_v7  ;;  %1247 = vmatpush.msrb.mxu1 %v949_v8  ;;  %v974_v0 = vld [vmem:[#allocation11 + $0xf18] sm:$0xff] }
 0x146   :  { %1157 = vmatmul.f32.vlgmr.msra.gmra.mxu0 %v2019_v55  ;;  %1189 = vmatpush.msra.mxu2 %v549_v9  ;;  %v574_v1 = vld [vmem:[#allocation11 + $0x298] sm:$0xff] }
 0x147   :  { %1212 = vmatpush.msra.mxu3 %v653_v10  ;;  %1225 = vmatpush.msrb.mxu0 %v837_v11  ;;  %v678_v2 = vld [vmem:[#allocation11 + $0x5d8] sm:$0xff] }
 0x148   :  { %1248 = vmatpush.msrb.mxu1 %v941_v12  ;;  %1190 = vmatpush.msra.mxu2 %v541_v13  ;;  %v862_v3 = vld [vmem:[#allocation11 + $0xb98] sm:$0xff] }
 0x149   :  { %1213 = vmatpush.msra.mxu3 %v645_v14  ;;  %1226 = vmatpush.msrb.mxu0 %v829_v15  ;;  %v966_v4 = vld [vmem:[#allocation11 + $0xed8] sm:$0xff] }
 0x14a   :  { %1249 = vmatpush.msrb.mxu1 %v933_v16  ;;  %1191 = vmatpush.msra.mxu2 %v533_v17  ;;  %v566_v5 = vld [vmem:[#allocation11 + $0x258] sm:$0xff] }
 0x14b   :  { %1214 = vmatpush.msra.mxu3 %v637_v18  ;;  %1227 = vmatpush.msrb.mxu0 %v821_v19  ;;  %v670_v6 = vld [vmem:[#allocation11 + $0x598] sm:$0xff] }
 0x14c   :  { %1250 = vmatpush.msrb.mxu1 %v925_v20  ;;  %1192 = vmatpush.msra.mxu2 %v525_v21  ;;  %v854_v7 = vld [vmem:[#allocation11 + $0xb58] sm:$0xff] }
 0x14d   :  { %1215 = vmatpush.msra.mxu3 %v629_v22  ;;  %1228 = vmatpush.msrb.mxu0 %v813_v23  ;;  %v958_v8 = vld [vmem:[#allocation11 + $0xe98] sm:$0xff] }
 0x14e   :  { %1251 = vmatpush.msrb.mxu1 %v917_v24  ;;  %1193 = vmatpush.msra.mxu2 %v517_v26  ;;  %v558_v9 = vld [vmem:[#allocation11 + $0x218] sm:$0xff] }
 0x14f   :  { %1216 = vmatpush.msra.mxu3 %v621_v27  ;;  %1229 = vmatpush.msrb.mxu0 %v805_v28  ;;  %v662_v10 = vld [vmem:[#allocation11 + $0x558] sm:$0xff] }
 0x150   :  { %1252 = vmatpush.msrb.mxu1 %v909_v29  ;;  %1217 = vmatmul.f32.vlgmr.msra.gmra.mxu3 %v2009_v25  ;;  %v846_v11 = vld [vmem:[#allocation11 + $0xb18] sm:$0xff] }
 0x151   :  { %1281 = vmatpush.msrb.mxu3 %v742_v30  ;;  %1194 = vmatpush.msra.mxu2 %v509_v31  ;;  %v950_v12 = vld [vmem:[#allocation11 + $0xe58] sm:$0xff] }
 0x152   :  { %1230 = vmatpush.msrb.mxu0 %v797_v32  ;;  %1253 = vmatpush.msrb.mxu1 %v901_v33  ;;  %v550_v13 = vld [vmem:[#allocation11 + $0x1d8] sm:$0xff] }
 0x153   :  { %1282 = vmatpush.msrb.mxu3 %v734_v34  ;;  %1195 = vmatpush.msra.mxu2 %v501_v35  ;;  %v654_v14 = vld [vmem:[#allocation11 + $0x518] sm:$0xff]  ;;  %v743_v34 = vld [vmem:[#allocation11 + $0x7e0] sm:$0xff] }
 0x154   :  { %1231 = vmatpush.msrb.mxu0 %v789_v37  ;;  %1254 = vmatpush.msrb.mxu1 %v893_v38  ;;  %v838_v15 = vld [vmem:[#allocation11 + $0xad8] sm:$0xff] }
 0x155   :  { %1283 = vmatpush.msrb.mxu3 %v726_v39  ;;  %1196 = vmatpush.msra.mxu2 %v493_v40  ;;  %v942_v16 = vld [vmem:[#allocation11 + $0xe18] sm:$0xff]  ;;  %v735_v39 = vld [vmem:[#allocation11 + $0x7a0] sm:$0xff] }
 0x156   :  { %1232 = vmatpush.msrb.mxu0 %v781_v41  ;;  %1255 = vmatpush.msrb.mxu1 %v885_v43  ;;  %v542_v17 = vld [vmem:[#allocation11 + $0x198] sm:$0xff] }
 0x157   :  { %1197 = vmatmul.f32.vlgmr.msra.gmra.mxu2 %v2012_v36  ;;  %1284 = vmatpush.msrb.mxu3 %v718_v44  ;;  %v646_v18 = vld [vmem:[#allocation11 + $0x4d8] sm:$0xff]  ;;  %v727_v44 = vld [vmem:[#allocation11 + $0x760] sm:$0xff] }
 0x158   :  { %1261 = vmatpush.msrb.mxu2 %v614_v45  ;;  %1233 = vmatpush.msrb.mxu0 %v773_v46  ;;  %v830_v19 = vld [vmem:[#allocation11 + $0xa98] sm:$0xff] }
 0x159   :  { %1256 = vmatpush.msrb.mxu1 %v877_v47  ;;  %1285 = vmatpush.msrb.mxu3 %v710_v48  ;;  %v934_v20 = vld [vmem:[#allocation11 + $0xdd8] sm:$0xff]  ;;  %v719_v48 = vld [vmem:[#allocation11 + $0x720] sm:$0xff] }
 0x15a   :  { %1257 = vmatmul.f32.vlgmr.msrb.gmra.mxu1 %v2015_v42  ;;  %1262 = vmatpush.msrb.mxu2 %v606_v49  ;;  %v534_v21 = vld [vmem:[#allocation11 + $0x158] sm:$0xff]  ;;  %v615_v49 = vld [vmem:[#allocation11 + $0x3e0] sm:$0xff] }
 0x15b   :  { %1321 = vmatpush.msra.mxu1 %v998_v50  ;;  %1234 = vmatpush.msrb.mxu0 %v765_v51  ;;  %v638_v22 = vld [vmem:[#allocation11 + $0x498] sm:$0xff] }
 0x15c   :  { %1263 = vmatpush.msrb.mxu2 %v598_v52  ;;  %1286 = vmatpush.msrb.mxu3 %v702_v53  ;;  %v822_v23 = vld [vmem:[#allocation11 + $0xa58] sm:$0xff]  ;;  %v711_v52 = vld [vmem:[#allocation11 + $0x6e0] sm:$0xff] }
 0x15d   :  { %1322 = vmatpush.msra.mxu1 %v990_v54  ;;  %1235 = vmatpush.msrb.mxu0 %v757_v56  ;;  %v926_v24 = vld [vmem:[#allocation11 + $0xd98] sm:$0xff]  ;;  %v607_v53 = vld [vmem:[#allocation11 + $0x3a0] sm:$0xff] }
 0x15e   :  { %1264 = vmatpush.msrb.mxu2 %v590_v57  ;;  %1287 = vmatpush.msrb.mxu3 %v694_v58  ;;  %v526_v26 = vld [vmem:[#allocation11 + $0x118] sm:$0xff]  ;;  %v999_v54 = vld [vmem:[#allocation11 + $0xfe0] sm:$0xff] }
 0x15f   :  { %1323 = vmatpush.msra.mxu1 %v982_v59  ;;  %1236 = vmatpush.msrb.mxu0 %v749_v60  ;;  %v630_v27 = vld [vmem:[#allocation11 + $0x458] sm:$0xff]  ;;  %v599_v57 = vld [vmem:[#allocation11 + $0x360] sm:$0xff] }
 0x160   :  { %1237 = vmatmul.f32.vlgmr.msrb.gmra.mxu0 %v2019_v55  ;;  %1265 = vmatpush.msrb.mxu2 %v582_v61  ;;  %v814_v28 = vld [vmem:[#allocation11 + $0xa18] sm:$0xff]  ;;  %v703_v58 = vld [vmem:[#allocation11 + $0x6a0] sm:$0xff] }
 0x161   :  { %1288 = vmatpush.msrb.mxu3 %v686_v62  ;;  %1301 = vmatpush.msra.mxu0 %v870_v63  ;;  %v918_v29 = vld [vmem:[#allocation11 + $0xd58] sm:$0xff]  ;;  %v991_v59 = vld [vmem:[#allocation11 + $0xfa0] sm:$0xff] }
 0x162   :  { %1324 = vmatpush.msra.mxu1 %v974_v0  ;;  %1266 = vmatpush.msrb.mxu2 %v574_v1  ;;  %v518_v30 = vld [vmem:[#allocation11 + $0xd8] sm:$0xff]  ;;  %v591_v61 = vld [vmem:[#allocation11 + $0x320] sm:$0xff] }
 0x163   :  { %1289 = vmatpush.msrb.mxu3 %v678_v2  ;;  %1302 = vmatpush.msra.mxu0 %v862_v3  ;;  %v622_v31 = vld [vmem:[#allocation11 + $0x418] sm:$0xff]  ;;  %v695_v62 = vld [vmem:[#allocation11 + $0x660] sm:$0xff] }
 0x164   :  { %1325 = vmatpush.msra.mxu1 %v966_v4  ;;  %1267 = vmatpush.msrb.mxu2 %v566_v5  ;;  %v806_v32 = vld [vmem:[#allocation11 + $0x9d8] sm:$0xff]  ;;  %v983_v63 = vld [vmem:[#allocation11 + $0xf60] sm:$0xff] }
 0x165   :  { %1290 = vmatpush.msrb.mxu3 %v670_v6  ;;  %1303 = vmatpush.msra.mxu0 %v854_v7  ;;  %v910_v33 = vld [vmem:[#allocation11 + $0xd18] sm:$0xff]  ;;  %v583_v1 = vld [vmem:[#allocation11 + $0x2e0] sm:$0xff] }
 0x166   :  { %1326 = vmatpush.msra.mxu1 %v958_v8  ;;  %1268 = vmatpush.msrb.mxu2 %v558_v9  ;;  %v510_v35 = vld [vmem:[#allocation11 + $0x98] sm:$0xff]  ;;  %v687_v2 = vld [vmem:[#allocation11 + $0x620] sm:$0xff] }
 0x167   :  { %1291 = vmatpush.msrb.mxu3 %v662_v10  ;;  %1304 = vmatpush.msra.mxu0 %v846_v11  ;;  %v798_v37 = vld [vmem:[#allocation11 + $0x998] sm:$0xff]  ;;  %v871_v3 = vld [vmem:[#allocation11 + $0xbe0] sm:$0xff] }
 0x168   :  { %1327 = vmatpush.msra.mxu1 %v950_v12  ;;  %1269 = vmatpush.msrb.mxu2 %v550_v13  ;;  %v902_v38 = vld [vmem:[#allocation11 + $0xcd8] sm:$0xff]  ;;  %v975_v4 = vld [vmem:[#allocation11 + $0xf20] sm:$0xff] }
 0x169   :  { %1292 = vmatpush.msrb.mxu3 %v654_v14  ;;  %1305 = vmatpush.msra.mxu0 %v838_v15  ;;  %v502_v40 = vld [vmem:[#allocation11 + $0x58] sm:$0xff]  ;;  %v575_v5 = vld [vmem:[#allocation11 + $0x2a0] sm:$0xff] }
 0x16a   :  { %1328 = vmatpush.msra.mxu1 %v942_v16  ;;  %1270 = vmatpush.msrb.mxu2 %v542_v17  ;;  %v790_v41 = vld [vmem:[#allocation11 + $0x958] sm:$0xff]  ;;  %v679_v6 = vld [vmem:[#allocation11 + $0x5e0] sm:$0xff] }
 0x16b   :  { %1293 = vmatpush.msrb.mxu3 %v646_v18  ;;  %1306 = vmatpush.msra.mxu0 %v830_v19  ;;  %v894_v43 = vld [vmem:[#allocation11 + $0xc98] sm:$0xff]  ;;  %v863_v7 = vld [vmem:[#allocation11 + $0xba0] sm:$0xff] }
 0x16c   :  { %1329 = vmatpush.msra.mxu1 %v934_v20  ;;  %1271 = vmatpush.msrb.mxu2 %v534_v21  ;;  %v494_v45 = vld [vmem:[#allocation11 + $0x18] sm:$0xff]  ;;  %v967_v8 = vld [vmem:[#allocation11 + $0xee0] sm:$0xff] }
 0x16d   :  { %1294 = vmatpush.msrb.mxu3 %v638_v22  ;;  %1307 = vmatpush.msra.mxu0 %v822_v23  ;;  %v782_v46 = vld [vmem:[#allocation11 + $0x918] sm:$0xff]  ;;  %v567_v9 = vld [vmem:[#allocation11 + $0x260] sm:$0xff] }
 0x16e   :  { %1330 = vmatpush.msra.mxu1 %v926_v24  ;;  %1272 = vmatpush.msrb.mxu2 %v526_v26  ;;  %v886_v47 = vld [vmem:[#allocation11 + $0xc58] sm:$0xff]  ;;  %v671_v10 = vld [vmem:[#allocation11 + $0x5a0] sm:$0xff] }
 0x16f   :  { %1295 = vmatpush.msrb.mxu3 %v630_v27  ;;  %1308 = vmatpush.msra.mxu0 %v814_v28  ;;  %v774_v50 = vld [vmem:[#allocation11 + $0x8d8] sm:$0xff]  ;;  %v855_v11 = vld [vmem:[#allocation11 + $0xb60] sm:$0xff] }
 0x170   :  { %1331 = vmatpush.msra.mxu1 %v918_v29  ;;  %1273 = vmatpush.msrb.mxu2 %v518_v30  ;;  %v878_v51 = vld [vmem:[#allocation11 + $0xc18] sm:$0xff]  ;;  %v959_v12 = vld [vmem:[#allocation11 + $0xea0] sm:$0xff] }
 0x171   :  { %1296 = vmatpush.msrb.mxu3 %v622_v31  ;;  %1309 = vmatpush.msra.mxu0 %v806_v32  ;;  %v766_v56 = vld [vmem:[#allocation11 + $0x898] sm:$0xff]  ;;  %v559_v13 = vld [vmem:[#allocation11 + $0x220] sm:$0xff] }
 0x172   :  { %1332 = vmatpush.msra.mxu1 %v910_v33  ;;  %1297 = vmatmul.f32.vlgmr.msrb.gmra.mxu3 %v2009_v25  ;;  %v758_v60 = vld [vmem:[#allocation11 + $0x858] sm:$0xff]  ;;  %v663_v14 = vld [vmem:[#allocation11 + $0x560] sm:$0xff] }
 0x173   :  { %1361 = vmatpush.msra.mxu3 %v743_v34  ;;  %1274 = vmatpush.msrb.mxu2 %v510_v35  ;;  %v750_v0 = vld [vmem:[#allocation11 + $0x818] sm:$0xff]  ;;  %v847_v15 = vld [vmem:[#allocation11 + $0xb20] sm:$0xff] }
 0x174   :  { %1310 = vmatpush.msra.mxu0 %v798_v37  ;;  %1333 = vmatpush.msra.mxu1 %v902_v38  ;;  %v951_v16 = vld [vmem:[#allocation11 + $0xe60] sm:$0xff] }
 0x175   :  { %1362 = vmatpush.msra.mxu3 %v735_v39  ;;  %1275 = vmatpush.msrb.mxu2 %v502_v40  ;;  %v551_v17 = vld [vmem:[#allocation11 + $0x1e0] sm:$0xff]  ;;  %v744_v39 = vld [vmem:[#allocation11 + $0x7e8] sm:$0xff] }
 0x176   :  { %1311 = vmatpush.msra.mxu0 %v790_v41  ;;  %1334 = vmatpush.msra.mxu1 %v894_v43  ;;  %v655_v18 = vld [vmem:[#allocation11 + $0x520] sm:$0xff] }
 0x177   :  { %1363 = vmatpush.msra.mxu3 %v727_v44  ;;  %1276 = vmatpush.msrb.mxu2 %v494_v45  ;;  %v839_v19 = vld [vmem:[#allocation11 + $0xae0] sm:$0xff]  ;;  %v736_v44 = vld [vmem:[#allocation11 + $0x7a8] sm:$0xff] }
 0x178   :  { %1312 = vmatpush.msra.mxu0 %v782_v46  ;;  %1335 = vmatpush.msra.mxu1 %v886_v47  ;;  %v943_v20 = vld [vmem:[#allocation11 + $0xe20] sm:$0xff] }
 0x179   :  { %1277 = vmatmul.f32.vlgmr.msrb.gmra.mxu2 %v2012_v36  ;;  %1364 = vmatpush.msra.mxu3 %v719_v48  ;;  %v543_v21 = vld [vmem:[#allocation11 + $0x1a0] sm:$0xff]  ;;  %v728_v48 = vld [vmem:[#allocation11 + $0x768] sm:$0xff] }
 0x17a   :  { %1341 = vmatpush.msra.mxu2 %v615_v49  ;;  %1313 = vmatpush.msra.mxu0 %v774_v50  ;;  %v647_v22 = vld [vmem:[#allocation11 + $0x4e0] sm:$0xff] }
 0x17b   :  { %1336 = vmatpush.msra.mxu1 %v878_v51  ;;  %1365 = vmatpush.msra.mxu3 %v711_v52  ;;  %v831_v23 = vld [vmem:[#allocation11 + $0xaa0] sm:$0xff]  ;;  %v720_v52 = vld [vmem:[#allocation11 + $0x728] sm:$0xff] }
 0x17c   :  { %1337 = vmatmul.f32.vlgmr.msra.gmra.mxu1 %v2015_v42  ;;  %1342 = vmatpush.msra.mxu2 %v607_v53  ;;  %v935_v24 = vld [vmem:[#allocation11 + $0xde0] sm:$0xff]  ;;  %v616_v53 = vld [vmem:[#allocation11 + $0x3e8] sm:$0xff] }
 0x17d   :  { %1401 = vmatpush.msrb.mxu1 %v999_v54  ;;  %1314 = vmatpush.msra.mxu0 %v766_v56  ;;  %v535_v26 = vld [vmem:[#allocation11 + $0x160] sm:$0xff] }
 0x17e   :  { %1343 = vmatpush.msra.mxu2 %v599_v57  ;;  %1366 = vmatpush.msra.mxu3 %v703_v58  ;;  %v639_v27 = vld [vmem:[#allocation11 + $0x4a0] sm:$0xff]  ;;  %v712_v57 = vld [vmem:[#allocation11 + $0x6e8] sm:$0xff] }
 0x17f   :  { %1402 = vmatpush.msrb.mxu1 %v991_v59  ;;  %1315 = vmatpush.msra.mxu0 %v758_v60  ;;  %v823_v28 = vld [vmem:[#allocation11 + $0xa60] sm:$0xff]  ;;  %v608_v58 = vld [vmem:[#allocation11 + $0x3a8] sm:$0xff] }
 0x180   :  { %1344 = vmatpush.msra.mxu2 %v591_v61  ;;  %1367 = vmatpush.msra.mxu3 %v695_v62  ;;  %v927_v29 = vld [vmem:[#allocation11 + $0xda0] sm:$0xff]  ;;  %v1000_v59 = vld [vmem:[#allocation11 + $0xfe8] sm:$0xff] }
 0x181   :  { %1403 = vmatpush.msrb.mxu1 %v983_v63  ;;  %1316 = vmatpush.msra.mxu0 %v750_v0  ;;  %v527_v30 = vld [vmem:[#allocation11 + $0x120] sm:$0xff]  ;;  %v600_v61 = vld [vmem:[#allocation11 + $0x368] sm:$0xff] }
 0x182   :  { %1317 = vmatmul.f32.vlgmr.msra.gmra.mxu0 %v2019_v55  ;;  %1345 = vmatpush.msra.mxu2 %v583_v1  ;;  %v631_v31 = vld [vmem:[#allocation11 + $0x460] sm:$0xff]  ;;  %v704_v62 = vld [vmem:[#allocation11 + $0x6a8] sm:$0xff] }
 0x183   :  { %1368 = vmatpush.msra.mxu3 %v687_v2  ;;  %1381 = vmatpush.msrb.mxu0 %v871_v3  ;;  %v815_v32 = vld [vmem:[#allocation11 + $0xa20] sm:$0xff]  ;;  %v992_v63 = vld [vmem:[#allocation11 + $0xfa8] sm:$0xff] }
 0x184   :  { %1404 = vmatpush.msrb.mxu1 %v975_v4  ;;  %1346 = vmatpush.msra.mxu2 %v575_v5  ;;  %v919_v33 = vld [vmem:[#allocation11 + $0xd60] sm:$0xff]  ;;  %v592_v1 = vld [vmem:[#allocation11 + $0x328] sm:$0xff] }
 0x185   :  { %1369 = vmatpush.msra.mxu3 %v679_v6  ;;  %1382 = vmatpush.msrb.mxu0 %v863_v7  ;;  %v519_v34 = vld [vmem:[#allocation11 + $0xe0] sm:$0xff]  ;;  %v696_v2 = vld [vmem:[#allocation11 + $0x668] sm:$0xff] }
 0x186   :  { %1405 = vmatpush.msrb.mxu1 %v967_v8  ;;  %1347 = vmatpush.msra.mxu2 %v567_v9  ;;  %v623_v35 = vld [vmem:[#allocation11 + $0x420] sm:$0xff]  ;;  %v984_v3 = vld [vmem:[#allocation11 + $0xf68] sm:$0xff] }
 0x187   :  { %1370 = vmatpush.msra.mxu3 %v671_v10  ;;  %1383 = vmatpush.msrb.mxu0 %v855_v11  ;;  %v807_v37 = vld [vmem:[#allocation11 + $0x9e0] sm:$0xff]  ;;  %v584_v5 = vld [vmem:[#allocation11 + $0x2e8] sm:$0xff] }
 0x188   :  { %1406 = vmatpush.msrb.mxu1 %v959_v12  ;;  %1348 = vmatpush.msra.mxu2 %v559_v13  ;;  %v911_v38 = vld [vmem:[#allocation11 + $0xd20] sm:$0xff]  ;;  %v688_v6 = vld [vmem:[#allocation11 + $0x628] sm:$0xff] }
 0x189   :  { %1371 = vmatpush.msra.mxu3 %v663_v14  ;;  %1384 = vmatpush.msrb.mxu0 %v847_v15  ;;  %v511_v40 = vld [vmem:[#allocation11 + $0xa0] sm:$0xff]  ;;  %v872_v7 = vld [vmem:[#allocation11 + $0xbe8] sm:$0xff] }
 0x18a   :  { %1407 = vmatpush.msrb.mxu1 %v951_v16  ;;  %1349 = vmatpush.msra.mxu2 %v551_v17  ;;  %v799_v41 = vld [vmem:[#allocation11 + $0x9a0] sm:$0xff]  ;;  %v976_v8 = vld [vmem:[#allocation11 + $0xf28] sm:$0xff] }
 0x18b   :  { %1372 = vmatpush.msra.mxu3 %v655_v18  ;;  %1385 = vmatpush.msrb.mxu0 %v839_v19  ;;  %v903_v43 = vld [vmem:[#allocation11 + $0xce0] sm:$0xff]  ;;  %v576_v9 = vld [vmem:[#allocation11 + $0x2a8] sm:$0xff] }
 0x18c   :  { %1408 = vmatpush.msrb.mxu1 %v943_v20  ;;  %1350 = vmatpush.msra.mxu2 %v543_v21  ;;  %v503_v45 = vld [vmem:[#allocation11 + $0x60] sm:$0xff]  ;;  %v680_v10 = vld [vmem:[#allocation11 + $0x5e8] sm:$0xff] }
 0x18d   :  { %1373 = vmatpush.msra.mxu3 %v647_v22  ;;  %1386 = vmatpush.msrb.mxu0 %v831_v23  ;;  %v791_v46 = vld [vmem:[#allocation11 + $0x960] sm:$0xff]  ;;  %v864_v11 = vld [vmem:[#allocation11 + $0xba8] sm:$0xff] }
 0x18e   :  { %1409 = vmatpush.msrb.mxu1 %v935_v24  ;;  %1351 = vmatpush.msra.mxu2 %v535_v26  ;;  %v895_v47 = vld [vmem:[#allocation11 + $0xca0] sm:$0xff]  ;;  %v968_v12 = vld [vmem:[#allocation11 + $0xee8] sm:$0xff] }
 0x18f   :  { %1374 = vmatpush.msra.mxu3 %v639_v27  ;;  %1387 = vmatpush.msrb.mxu0 %v823_v28  ;;  %v495_v49 = vld [vmem:[#allocation11 + $0x20] sm:$0xff]  ;;  %v568_v13 = vld [vmem:[#allocation11 + $0x268] sm:$0xff] }
 0x190   :  { %1410 = vmatpush.msrb.mxu1 %v927_v29  ;;  %1352 = vmatpush.msra.mxu2 %v527_v30  ;;  %v783_v50 = vld [vmem:[#allocation11 + $0x920] sm:$0xff]  ;;  %v672_v14 = vld [vmem:[#allocation11 + $0x5a8] sm:$0xff] }
 0x191   :  { %1375 = vmatpush.msra.mxu3 %v631_v31  ;;  %1388 = vmatpush.msrb.mxu0 %v815_v32  ;;  %v887_v51 = vld [vmem:[#allocation11 + $0xc60] sm:$0xff]  ;;  %v856_v15 = vld [vmem:[#allocation11 + $0xb68] sm:$0xff] }
 0x192   :  { %1411 = vmatpush.msrb.mxu1 %v919_v33  ;;  %1353 = vmatpush.msra.mxu2 %v519_v34  ;;  %v775_v54 = vld [vmem:[#allocation11 + $0x8e0] sm:$0xff]  ;;  %v960_v16 = vld [vmem:[#allocation11 + $0xea8] sm:$0xff] }
 0x193   :  { %1376 = vmatpush.msra.mxu3 %v623_v35  ;;  %1389 = vmatpush.msrb.mxu0 %v807_v37  ;;  %v879_v56 = vld [vmem:[#allocation11 + $0xc20] sm:$0xff]  ;;  %v560_v17 = vld [vmem:[#allocation11 + $0x228] sm:$0xff] }
 0x194   :  { %1412 = vmatpush.msrb.mxu1 %v911_v38  ;;  %1377 = vmatmul.f32.vlgmr.msra.gmra.mxu3 %v2009_v25  ;;  %v767_v60 = vld [vmem:[#allocation11 + $0x8a0] sm:$0xff]  ;;  %v664_v18 = vld [vmem:[#allocation11 + $0x568] sm:$0xff] }
 0x195   :  { %1441 = vmatpush.msrb.mxu3 %v744_v39  ;;  %1354 = vmatpush.msra.mxu2 %v511_v40  ;;  %v759_v0 = vld [vmem:[#allocation11 + $0x860] sm:$0xff]  ;;  %v848_v19 = vld [vmem:[#allocation11 + $0xb28] sm:$0xff] }
 0x196   :  { %1390 = vmatpush.msrb.mxu0 %v799_v41  ;;  %1413 = vmatpush.msrb.mxu1 %v903_v43  ;;  %v751_v4 = vld [vmem:[#allocation11 + $0x820] sm:$0xff]  ;;  %v952_v20 = vld [vmem:[#allocation11 + $0xe68] sm:$0xff] }
 0x197   :  { %1442 = vmatpush.msrb.mxu3 %v736_v44  ;;  %1355 = vmatpush.msra.mxu2 %v503_v45  ;;  %v552_v21 = vld [vmem:[#allocation11 + $0x1e8] sm:$0xff]  ;;  %v745_v44 = vld [vmem:[#allocation11 + $0x7f0] sm:$0xff] }
 0x198   :  { %1391 = vmatpush.msrb.mxu0 %v791_v46  ;;  %1414 = vmatpush.msrb.mxu1 %v895_v47  ;;  %v656_v22 = vld [vmem:[#allocation11 + $0x528] sm:$0xff] }
 0x199   :  { %1443 = vmatpush.msrb.mxu3 %v728_v48  ;;  %1356 = vmatpush.msra.mxu2 %v495_v49  ;;  %v840_v23 = vld [vmem:[#allocation11 + $0xae8] sm:$0xff]  ;;  %v737_v48 = vld [vmem:[#allocation11 + $0x7b0] sm:$0xff] }
 0x19a   :  { %1392 = vmatpush.msrb.mxu0 %v783_v50  ;;  %1415 = vmatpush.msrb.mxu1 %v887_v51  ;;  %v944_v24 = vld [vmem:[#allocation11 + $0xe28] sm:$0xff] }
 0x19b   :  { %1357 = vmatmul.f32.vlgmr.msra.gmra.mxu2 %v2012_v36  ;;  %1444 = vmatpush.msrb.mxu3 %v720_v52  ;;  %v544_v26 = vld [vmem:[#allocation11 + $0x1a8] sm:$0xff]  ;;  %v729_v52 = vld [vmem:[#allocation11 + $0x770] sm:$0xff] }
 0x19c   :  { %1421 = vmatpush.msrb.mxu2 %v616_v53  ;;  %1393 = vmatpush.msrb.mxu0 %v775_v54  ;;  %v648_v27 = vld [vmem:[#allocation11 + $0x4e8] sm:$0xff] }
 0x19d   :  { %1416 = vmatpush.msrb.mxu1 %v879_v56  ;;  %1445 = vmatpush.msrb.mxu3 %v712_v57  ;;  %v832_v28 = vld [vmem:[#allocation11 + $0xaa8] sm:$0xff]  ;;  %v721_v57 = vld [vmem:[#allocation11 + $0x730] sm:$0xff] }
 0x19e   :  { %1417 = vmatmul.f32.vlgmr.msrb.gmra.mxu1 %v2015_v42  ;;  %1422 = vmatpush.msrb.mxu2 %v608_v58  ;;  %v936_v29 = vld [vmem:[#allocation11 + $0xde8] sm:$0xff]  ;;  %v617_v58 = vld [vmem:[#allocation11 + $0x3f0] sm:$0xff] }
 0x19f   :  { %1481 = vmatpush.msra.mxu1 %v1000_v59  ;;  %1394 = vmatpush.msrb.mxu0 %v767_v60  ;;  %v536_v30 = vld [vmem:[#allocation11 + $0x168] sm:$0xff] }
 0x1a0   :  { %1423 = vmatpush.msrb.mxu2 %v600_v61  ;;  %1446 = vmatpush.msrb.mxu3 %v704_v62  ;;  %v640_v31 = vld [vmem:[#allocation11 + $0x4a8] sm:$0xff]  ;;  %v713_v61 = vld [vmem:[#allocation11 + $0x6f0] sm:$0xff] }
 0x1a1   :  { %1482 = vmatpush.msra.mxu1 %v992_v63  ;;  %1395 = vmatpush.msrb.mxu0 %v759_v0  ;;  %v824_v32 = vld [vmem:[#allocation11 + $0xa68] sm:$0xff]  ;;  %v609_v62 = vld [vmem:[#allocation11 + $0x3b0] sm:$0xff] }
 0x1a2   :  { %1424 = vmatpush.msrb.mxu2 %v592_v1  ;;  %1447 = vmatpush.msrb.mxu3 %v696_v2  ;;  %v928_v33 = vld [vmem:[#allocation11 + $0xda8] sm:$0xff]  ;;  %v1001_v63 = vld [vmem:[#allocation11 + $0xff0] sm:$0xff] }
 0x1a3   :  { %1483 = vmatpush.msra.mxu1 %v984_v3  ;;  %1396 = vmatpush.msrb.mxu0 %v751_v4  ;;  %v528_v34 = vld [vmem:[#allocation11 + $0x128] sm:$0xff]  ;;  %v601_v1 = vld [vmem:[#allocation11 + $0x370] sm:$0xff] }
 0x1a4   :  { %1397 = vmatmul.f32.vlgmr.msrb.gmra.mxu0 %v2019_v55  ;;  %1425 = vmatpush.msrb.mxu2 %v584_v5  ;;  %v632_v35 = vld [vmem:[#allocation11 + $0x468] sm:$0xff]  ;;  %v705_v2 = vld [vmem:[#allocation11 + $0x6b0] sm:$0xff] }
 0x1a5   :  { %1448 = vmatpush.msrb.mxu3 %v688_v6  ;;  %1461 = vmatpush.msra.mxu0 %v872_v7  ;;  %v816_v37 = vld [vmem:[#allocation11 + $0xa28] sm:$0xff]  ;;  %v993_v3 = vld [vmem:[#allocation11 + $0xfb0] sm:$0xff] }
 0x1a6   :  { %1484 = vmatpush.msra.mxu1 %v976_v8  ;;  %1426 = vmatpush.msrb.mxu2 %v576_v9  ;;  %v920_v38 = vld [vmem:[#allocation11 + $0xd68] sm:$0xff]  ;;  %v593_v5 = vld [vmem:[#allocation11 + $0x330] sm:$0xff] }
 0x1a7   :  { %1449 = vmatpush.msrb.mxu3 %v680_v10  ;;  %1462 = vmatpush.msra.mxu0 %v864_v11  ;;  %v520_v39 = vld [vmem:[#allocation11 + $0xe8] sm:$0xff]  ;;  %v697_v6 = vld [vmem:[#allocation11 + $0x670] sm:$0xff] }
 0x1a8   :  { %1485 = vmatpush.msra.mxu1 %v968_v12  ;;  %1427 = vmatpush.msrb.mxu2 %v568_v13  ;;  %v624_v40 = vld [vmem:[#allocation11 + $0x428] sm:$0xff]  ;;  %v985_v7 = vld [vmem:[#allocation11 + $0xf70] sm:$0xff] }
 0x1a9   :  { %1450 = vmatpush.msrb.mxu3 %v672_v14  ;;  %1463 = vmatpush.msra.mxu0 %v856_v15  ;;  %v808_v41 = vld [vmem:[#allocation11 + $0x9e8] sm:$0xff]  ;;  %v585_v9 = vld [vmem:[#allocation11 + $0x2f0] sm:$0xff] }
 0x1aa   :  { %1486 = vmatpush.msra.mxu1 %v960_v16  ;;  %1428 = vmatpush.msrb.mxu2 %v560_v17  ;;  %v912_v43 = vld [vmem:[#allocation11 + $0xd28] sm:$0xff]  ;;  %v689_v10 = vld [vmem:[#allocation11 + $0x630] sm:$0xff] }
 0x1ab   :  { %1451 = vmatpush.msrb.mxu3 %v664_v18  ;;  %1464 = vmatpush.msra.mxu0 %v848_v19  ;;  %v512_v45 = vld [vmem:[#allocation11 + $0xa8] sm:$0xff]  ;;  %v873_v11 = vld [vmem:[#allocation11 + $0xbf0] sm:$0xff] }
 0x1ac   :  { %1487 = vmatpush.msra.mxu1 %v952_v20  ;;  %1429 = vmatpush.msrb.mxu2 %v552_v21  ;;  %v800_v46 = vld [vmem:[#allocation11 + $0x9a8] sm:$0xff]  ;;  %v977_v12 = vld [vmem:[#allocation11 + $0xf30] sm:$0xff] }
 0x1ad   :  { %1452 = vmatpush.msrb.mxu3 %v656_v22  ;;  %1465 = vmatpush.msra.mxu0 %v840_v23  ;;  %v904_v47 = vld [vmem:[#allocation11 + $0xce8] sm:$0xff]  ;;  %v577_v13 = vld [vmem:[#allocation11 + $0x2b0] sm:$0xff] }
 0x1ae   :  { %1488 = vmatpush.msra.mxu1 %v944_v24  ;;  %1430 = vmatpush.msrb.mxu2 %v544_v26  ;;  %v504_v49 = vld [vmem:[#allocation11 + $0x68] sm:$0xff]  ;;  %v681_v14 = vld [vmem:[#allocation11 + $0x5f0] sm:$0xff] }
 0x1af   :  { %1453 = vmatpush.msrb.mxu3 %v648_v27  ;;  %1466 = vmatpush.msra.mxu0 %v832_v28  ;;  %v792_v50 = vld [vmem:[#allocation11 + $0x968] sm:$0xff]  ;;  %v865_v15 = vld [vmem:[#allocation11 + $0xbb0] sm:$0xff] }
 0x1b0   :  { %1489 = vmatpush.msra.mxu1 %v936_v29  ;;  %1431 = vmatpush.msrb.mxu2 %v536_v30  ;;  %v896_v51 = vld [vmem:[#allocation11 + $0xca8] sm:$0xff]  ;;  %v969_v16 = vld [vmem:[#allocation11 + $0xef0] sm:$0xff] }
 0x1b1   :  { %1454 = vmatpush.msrb.mxu3 %v640_v31  ;;  %1467 = vmatpush.msra.mxu0 %v824_v32  ;;  %v496_v53 = vld [vmem:[#allocation11 + $0x28] sm:$0xff]  ;;  %v569_v17 = vld [vmem:[#allocation11 + $0x270] sm:$0xff] }
 0x1b2   :  { %1490 = vmatpush.msra.mxu1 %v928_v33  ;;  %1432 = vmatpush.msrb.mxu2 %v528_v34  ;;  %v784_v54 = vld [vmem:[#allocation11 + $0x928] sm:$0xff]  ;;  %v673_v18 = vld [vmem:[#allocation11 + $0x5b0] sm:$0xff] }
 0x1b3   :  { %1455 = vmatpush.msrb.mxu3 %v632_v35  ;;  %1468 = vmatpush.msra.mxu0 %v816_v37  ;;  %v888_v56 = vld [vmem:[#allocation11 + $0xc68] sm:$0xff]  ;;  %v857_v19 = vld [vmem:[#allocation11 + $0xb70] sm:$0xff] }
 0x1b4   :  { %1491 = vmatpush.msra.mxu1 %v920_v38  ;;  %1433 = vmatpush.msrb.mxu2 %v520_v39  ;;  %v776_v59 = vld [vmem:[#allocation11 + $0x8e8] sm:$0xff]  ;;  %v961_v20 = vld [vmem:[#allocation11 + $0xeb0] sm:$0xff] }
 0x1b5   :  { %1456 = vmatpush.msrb.mxu3 %v624_v40  ;;  %1469 = vmatpush.msra.mxu0 %v808_v41  ;;  %v880_v60 = vld [vmem:[#allocation11 + $0xc28] sm:$0xff]  ;;  %v561_v21 = vld [vmem:[#allocation11 + $0x230] sm:$0xff] }
 0x1b6   :  { %1492 = vmatpush.msra.mxu1 %v912_v43  ;;  %1457 = vmatmul.f32.vlgmr.msrb.gmra.mxu3 %v2009_v25  ;;  %v768_v0 = vld [vmem:[#allocation11 + $0x8a8] sm:$0xff]  ;;  %v665_v22 = vld [vmem:[#allocation11 + $0x570] sm:$0xff] }
 0x1b7   :  { %1521 = vmatpush.msra.mxu3 %v745_v44  ;;  %1434 = vmatpush.msrb.mxu2 %v512_v45  ;;  %v760_v4 = vld [vmem:[#allocation11 + $0x868] sm:$0xff]  ;;  %v849_v23 = vld [vmem:[#allocation11 + $0xb30] sm:$0xff] }
 0x1b8   :  { %1470 = vmatpush.msra.mxu0 %v800_v46  ;;  %1493 = vmatpush.msra.mxu1 %v904_v47  ;;  %v752_v8 = vld [vmem:[#allocation11 + $0x828] sm:$0xff]  ;;  %v953_v24 = vld [vmem:[#allocation11 + $0xe70] sm:$0xff] }
 0x1b9   :  { %1522 = vmatpush.msra.mxu3 %v737_v48  ;;  %1435 = vmatpush.msrb.mxu2 %v504_v49  ;;  %v553_v26 = vld [vmem:[#allocation11 + $0x1f0] sm:$0xff]  ;;  %v746_v48 = vld [vmem:[#allocation11 + $0x7f8] sm:$0xff] }
 0x1ba   :  { %1471 = vmatpush.msra.mxu0 %v792_v50  ;;  %1494 = vmatpush.msra.mxu1 %v896_v51  ;;  %v657_v27 = vld [vmem:[#allocation11 + $0x530] sm:$0xff] }
 0x1bb   :  { %1523 = vmatpush.msra.mxu3 %v729_v52  ;;  %1436 = vmatpush.msrb.mxu2 %v496_v53  ;;  %v841_v28 = vld [vmem:[#allocation11 + $0xaf0] sm:$0xff]  ;;  %v738_v52 = vld [vmem:[#allocation11 + $0x7b8] sm:$0xff] }
 0x1bc   :  { %1472 = vmatpush.msra.mxu0 %v784_v54  ;;  %1495 = vmatpush.msra.mxu1 %v888_v56  ;;  %v945_v29 = vld [vmem:[#allocation11 + $0xe30] sm:$0xff] }
 0x1bd   :  { %1437 = vmatmul.f32.vlgmr.msrb.gmra.mxu2 %v2012_v36  ;;  %1524 = vmatpush.msra.mxu3 %v721_v57  ;;  %v545_v30 = vld [vmem:[#allocation11 + $0x1b0] sm:$0xff]  ;;  %v730_v57 = vld [vmem:[#allocation11 + $0x778] sm:$0xff] }
 0x1be   :  { %1501 = vmatpush.msra.mxu2 %v617_v58  ;;  %1473 = vmatpush.msra.mxu0 %v776_v59  ;;  %v649_v31 = vld [vmem:[#allocation11 + $0x4f0] sm:$0xff] }
 0x1bf   :  { %1496 = vmatpush.msra.mxu1 %v880_v60  ;;  %1525 = vmatpush.msra.mxu3 %v713_v61  ;;  %v833_v32 = vld [vmem:[#allocation11 + $0xab0] sm:$0xff]  ;;  %v722_v61 = vld [vmem:[#allocation11 + $0x738] sm:$0xff] }
 0x1c0   :  { %1497 = vmatmul.f32.vlgmr.msra.gmra.mxu1 %v2015_v42  ;;  %1502 = vmatpush.msra.mxu2 %v609_v62  ;;  %v937_v33 = vld [vmem:[#allocation11 + $0xdf0] sm:$0xff]  ;;  %v618_v62 = vld [vmem:[#allocation11 + $0x3f8] sm:$0xff] }
 0x1c1   :  { %1561 = vmatpush.msrb.mxu1 %v1001_v63  ;;  %1474 = vmatpush.msra.mxu0 %v768_v0  ;;  %v537_v34 = vld [vmem:[#allocation11 + $0x170] sm:$0xff]  ;;  %v2042_v0 = vpop.f32.mrf.mxu2 }
 0x1c2   :  { %1503 = vmatpush.msra.mxu2 %v601_v1  ;;  %1526 = vmatpush.msra.mxu3 %v705_v2  ;;  %v641_v35 = vld [vmem:[#allocation11 + $0x4b0] sm:$0xff]  ;;  %v714_v2 = vld [vmem:[#allocation11 + $0x6f8] sm:$0xff] }
 0x1c3   :  { %1562 = vmatpush.msrb.mxu1 %v993_v3  ;;  %1475 = vmatpush.msra.mxu0 %v760_v4  ;;  %v825_v37 = vld [vmem:[#allocation11 + $0xa70] sm:$0xff]  ;;  %v610_v3 = vld [vmem:[#allocation11 + $0x3b8] sm:$0xff] }
 0x1c4   :  { %1504 = vmatpush.msra.mxu2 %v593_v5  ;;  %1527 = vmatpush.msra.mxu3 %v697_v6  ;;  %v929_v38 = vld [vmem:[#allocation11 + $0xdb0] sm:$0xff]  ;;  %v1002_v4 = vld [vmem:[#allocation11 + $0xff8] sm:$0xff] }
 0x1c5   :  { %1563 = vmatpush.msrb.mxu1 %v985_v7  ;;  %1476 = vmatpush.msra.mxu0 %v752_v8  ;;  %v529_v39 = vld [vmem:[#allocation11 + $0x130] sm:$0xff]  ;;  %v602_v6 = vld [vmem:[#allocation11 + $0x378] sm:$0xff] }
 0x1c6   :  { %1477 = vmatmul.f32.vlgmr.msra.gmra.mxu0 %v2019_v55  ;;  %1505 = vmatpush.msra.mxu2 %v585_v9  ;;  %v633_v40 = vld [vmem:[#allocation11 + $0x470] sm:$0xff]  ;;  %v706_v7 = vld [vmem:[#allocation11 + $0x6b8] sm:$0xff] }
 0x1c7   :  { %1528 = vmatpush.msra.mxu3 %v689_v10  ;;  %1541 = vmatpush.msrb.mxu0 %v873_v11  ;;  %v817_v41 = vld [vmem:[#allocation11 + $0xa30] sm:$0xff]  ;;  %v994_v8 = vld [vmem:[#allocation11 + $0xfb8] sm:$0xff] }
 0x1c8   :  { %1564 = vmatpush.msrb.mxu1 %v977_v12  ;;  %1506 = vmatpush.msra.mxu2 %v577_v13  ;;  %v921_v43 = vld [vmem:[#allocation11 + $0xd70] sm:$0xff]  ;;  %v594_v10 = vld [vmem:[#allocation11 + $0x338] sm:$0xff]  ;;  %v2046_v12 = vpop.f32.mrf.mxu3 }
 0x1c9   :  { %1529 = vmatpush.msra.mxu3 %v681_v14  ;;  %1542 = vmatpush.msrb.mxu0 %v865_v15  ;;  %v521_v44 = vld [vmem:[#allocation11 + $0xf0] sm:$0xff]  ;;  %v698_v11 = vld [vmem:[#allocation11 + $0x678] sm:$0xff] }
 0x1ca   :  { %1565 = vmatpush.msrb.mxu1 %v969_v16  ;;  %1507 = vmatpush.msra.mxu2 %v569_v17  ;;  %v625_v45 = vld [vmem:[#allocation11 + $0x430] sm:$0xff]  ;;  %v986_v13 = vld [vmem:[#allocation11 + $0xf78] sm:$0xff]  ;;  %v2048_v16 = vpop.f32.mrf.mxu0 }
 0x1cb   :  { %1530 = vmatpush.msra.mxu3 %v673_v18  ;;  %1543 = vmatpush.msrb.mxu0 %v857_v19  ;;  %v809_v46 = vld [vmem:[#allocation11 + $0x9f0] sm:$0xff]  ;;  %v586_v15 = vld [vmem:[#allocation11 + $0x2f8] sm:$0xff] }
 0x1cc   :  { %1566 = vmatpush.msrb.mxu1 %v961_v20  ;;  %1508 = vmatpush.msra.mxu2 %v561_v21  ;;  %v913_v47 = vld [vmem:[#allocation11 + $0xd30] sm:$0xff]  ;;  %v690_v17 = vld [vmem:[#allocation11 + $0x638] sm:$0xff]  ;;  %v2050_v21 = vpop.f32.mrf.mxu1 }
 0x1cd   :  { %1531 = vmatpush.msra.mxu3 %v665_v22  ;;  %1544 = vmatpush.msrb.mxu0 %v849_v23  ;;  %v513_v49 = vld [vmem:[#allocation11 + $0xb0] sm:$0xff]  ;;  %v874_v18 = vld [vmem:[#allocation11 + $0xbf8] sm:$0xff]  ;;  %v1118_v22 = vpop.f32.mrf.mxu2 }
 0x1ce   :  { %1567 = vmatpush.msrb.mxu1 %v953_v24  ;;  %1509 = vmatpush.msra.mxu2 %v553_v26  ;;  %v801_v50 = vld [vmem:[#allocation11 + $0x9b0] sm:$0xff]  ;;  %v978_v19 = vld [vmem:[#allocation11 + $0xf38] sm:$0xff] }
 0x1cf   :  { %1532 = vmatpush.msra.mxu3 %v657_v27  ;;  %1545 = vmatpush.msrb.mxu0 %v841_v28  ;;  %v905_v51 = vld [vmem:[#allocation11 + $0xcf0] sm:$0xff]  ;;  %v578_v20 = vld [vmem:[#allocation11 + $0x2b8] sm:$0xff] }
 0x1d0   :  { %1568 = vmatpush.msrb.mxu1 %v945_v29  ;;  %1510 = vmatpush.msra.mxu2 %v545_v30  ;;  %v505_v53 = vld [vmem:[#allocation11 + $0x70] sm:$0xff]  ;;  %v682_v23 = vld [vmem:[#allocation11 + $0x5f8] sm:$0xff] }
 0x1d1   :  { %1533 = vmatpush.msra.mxu3 %v649_v31  ;;  %1546 = vmatpush.msrb.mxu0 %v833_v32  ;;  %v793_v54 = vld [vmem:[#allocation11 + $0x970] sm:$0xff]  ;;  %v866_v24 = vld [vmem:[#allocation11 + $0xbb8] sm:$0xff]  ;;  %v2053_v32 = vld [vmem:[#allocation13] sm:$0xff] }
 0x1d2   :  { %1569 = vmatpush.msrb.mxu1 %v937_v33  ;;  %1511 = vmatpush.msra.mxu2 %v537_v34  ;;  %v897_v56 = vld [vmem:[#allocation11 + $0xcb0] sm:$0xff]  ;;  %v970_v26 = vld [vmem:[#allocation11 + $0xef8] sm:$0xff] }
 0x1d3   :  { %1534 = vmatpush.msra.mxu3 %v641_v35  ;;  %1547 = vmatpush.msrb.mxu0 %v825_v37  ;;  %v497_v58 = vld [vmem:[#allocation11 + $0x30] sm:$0xff]  ;;  %v570_v27 = vld [vmem:[#allocation11 + $0x278] sm:$0xff]  ;;  %v1006_v35 = vperm.slane %v2053_v32, 1 }
 0x1d4   :  { %1570 = vmatpush.msrb.mxu1 %v929_v38  ;;  %1512 = vmatpush.msra.mxu2 %v529_v39  ;;  %v785_v59 = vld [vmem:[#allocation11 + $0x930] sm:$0xff]  ;;  %v674_v28 = vld [vmem:[#allocation11 + $0x5b8] sm:$0xff]  ;;  %v1138_v39 = vpop.f32.mrf.mxu3 }
 0x1d5   :  { %1535 = vmatpush.msra.mxu3 %v633_v40  ;;  %1548 = vmatpush.msrb.mxu0 %v817_v41  ;;  %v889_v60 = vld [vmem:[#allocation11 + $0xc70] sm:$0xff]  ;;  %v858_v29 = vld [vmem:[#allocation11 + $0xb78] sm:$0xff] }
 0x1d6   :  { %1571 = vmatpush.msrb.mxu1 %v921_v43  ;;  %1513 = vmatpush.msra.mxu2 %v521_v44  ;;  %v777_v63 = vld [vmem:[#allocation11 + $0x8f0] sm:$0xff]  ;;  %v962_v30 = vld [vmem:[#allocation11 + $0xeb8] sm:$0xff]  ;;  %v1007_v43 = vperm.slane %v2053_v32, 2 }
 0x1d7   :  { %1536 = vmatpush.msra.mxu3 %v625_v45  ;;  %1549 = vmatpush.msrb.mxu0 %v809_v46  ;;  %v881_v1 = vld [vmem:[#allocation11 + $0xc30] sm:$0xff]  ;;  %v562_v31 = vld [vmem:[#allocation11 + $0x238] sm:$0xff]  ;;  %v1158_v46 = vpop.f32.mrf.mxu0 }
 0x1d8   :  { %1572 = vmatpush.msrb.mxu1 %v913_v47  ;;  %1537 = vmatmul.f32.vlgmr.msra.gmra.mxu3 %v2009_v25  ;;  %v769_v5 = vld [vmem:[#allocation11 + $0x8b0] sm:$0xff]  ;;  %v666_v33 = vld [vmem:[#allocation11 + $0x578] sm:$0xff] }
 0x1d9   :  { %1601 = vmatpush.msrb.mxu3 %v746_v48  ;;  %1514 = vmatpush.msra.mxu2 %v513_v49  ;;  %v761_v9 = vld [vmem:[#allocation11 + $0x870] sm:$0xff]  ;;  %v850_v34 = vld [vmem:[#allocation11 + $0xb38] sm:$0xff] }
 0x1da   :  { %1550 = vmatpush.msrb.mxu0 %v801_v50  ;;  %1573 = vmatpush.msrb.mxu1 %v905_v51  ;;  %v753_v14 = vld [vmem:[#allocation11 + $0x830] sm:$0xff]  ;;  %v954_v37 = vld [vmem:[#allocation11 + $0xe78] sm:$0xff]  ;;  %v1198_v47 = vpop.f32.mrf.mxu2  ;;  %v1119_v50 = vadd.f32 %v1118_v22, %v1006_v35 }
 0x1db   :  { %1602 = vmatpush.msrb.mxu3 %v738_v52  ;;  %1515 = vmatpush.msra.mxu2 %v505_v53  ;;  %v554_v38 = vld [vmem:[#allocation11 + $0x1f8] sm:$0xff]  ;;  %v1178_v53 = vpop.f32.mrf.mxu1 }
 0x1dc   :  { %1551 = vmatpush.msrb.mxu0 %v793_v54  ;;  %1574 = vmatpush.msrb.mxu1 %v897_v56  ;;  %v658_v40 = vld [vmem:[#allocation11 + $0x538] sm:$0xff] }
 0x1dd   :  { %1603 = vmatpush.msrb.mxu3 %v730_v57  ;;  %1516 = vmatpush.msra.mxu2 %v497_v58  ;;  %v842_v41 = vld [vmem:[#allocation11 + $0xaf8] sm:$0xff]  ;;  %v1005_v57 = vperm.slane %v2053_v32, 0  ;;  %v1199_v58 = vadd.f32 %v1198_v47, %v1007_v43 }
 0x1de   :  { %1552 = vmatpush.msrb.mxu0 %v785_v59  ;;  %1575 = vmatpush.msrb.mxu1 %v889_v60  ;;  %v946_v44 = vld [vmem:[#allocation11 + $0xe38] sm:$0xff] }
 0x1df   :  { %1517 = vmatmul.f32.vlgmr.msra.gmra.mxu2 %v2012_v36  ;;  %1604 = vmatpush.msrb.mxu3 %v722_v61  ;;  %v546_v45 = vld [vmem:[#allocation11 + $0x1b8] sm:$0xff] }
 0x1e0   :  { %1581 = vmatpush.msrb.mxu2 %v618_v62  ;;  %1553 = vmatpush.msrb.mxu0 %v777_v63  ;;  %v650_v48 = vld [vmem:[#allocation11 + $0x4f8] sm:$0xff]  ;;  %v1139_v63 = vadd.f32 %v1138_v39, %v1119_v50 }
 0x1e1   :  { %1576 = vmatpush.msrb.mxu1 %v881_v1  ;;  %1605 = vmatpush.msrb.mxu3 %v714_v2  ;;  %v834_v49 = vld [vmem:[#allocation11 + $0xab8] sm:$0xff] }
 0x1e2   :  { %1577 = vmatmul.f32.vlgmr.msrb.gmra.mxu1 %v2015_v42  ;;  %1582 = vmatpush.msrb.mxu2 %v610_v3  ;;  %v938_v51 = vld [vmem:[#allocation11 + $0xdf8] sm:$0xff]  ;;  %v1218_v3 = vpop.f32.mrf.mxu3 }
 0x1e3   :  { %1641 = vmatpush.msra.mxu1 %v1002_v4  ;;  %1554 = vmatpush.msrb.mxu0 %v769_v5  ;;  %v538_v52 = vld [vmem:[#allocation11 + $0x178] sm:$0xff] }
 0x1e4   :  { %1583 = vmatpush.msrb.mxu2 %v602_v6  ;;  %1606 = vmatpush.msrb.mxu3 %v706_v7  ;;  %v642_v54 = vld [vmem:[#allocation11 + $0x4b8] sm:$0xff]  ;;  %v1039_v6 = vadd.f32 %v2042_v0, %v1005_v57  ;;  %v1219_v7 = vadd.f32 %v1218_v3, %v1199_v58  ;;  %v1010_v57 = vperm.slane %v2053_v32, 5 }
 0x1e5   :  { %1642 = vmatpush.msra.mxu1 %v994_v8  ;;  %1555 = vmatpush.msrb.mxu0 %v761_v9  ;;  %v826_v56 = vld [vmem:[#allocation11 + $0xa78] sm:$0xff]  ;;  %v1238_v9 = vpop.f32.mrf.mxu0 }
 0x1e6   :  { %1584 = vmatpush.msrb.mxu2 %v594_v10  ;;  %1607 = vmatpush.msrb.mxu3 %v698_v11  ;;  %v930_v59 = vld [vmem:[#allocation11 + $0xdb8] sm:$0xff] }
 0x1e7   :  { %1643 = vmatpush.msra.mxu1 %v986_v13  ;;  %1556 = vmatpush.msrb.mxu0 %v753_v14  ;;  %v530_v60 = vld [vmem:[#allocation11 + $0x138] sm:$0xff]  ;;  %v1159_v13 = vadd.f32 %v1158_v46, %v1139_v63  ;;  %v1009_v63 = vperm.slane %v2053_v32, 4 }
 0x1e8   :  { %1557 = vmatmul.f32.vlgmr.msrb.gmra.mxu0 %v2019_v55  ;;  %1585 = vmatpush.msrb.mxu2 %v586_v15  ;;  %v634_v61 = vld [vmem:[#allocation11 + $0x478] sm:$0xff]  ;;  %v1008_v15 = vperm.slane %v2053_v32, 3 }
 0x1e9   :  { %1608 = vmatpush.msrb.mxu3 %v690_v17  ;;  %1621 = vmatpush.msra.mxu0 %v874_v18  ;;  %v818_v62 = vld [vmem:[#allocation11 + $0xa38] sm:$0xff]  ;;  %v1258_v17 = vpop.f32.mrf.mxu1 }
 0x1ea   :  { %1644 = vmatpush.msra.mxu1 %v978_v19  ;;  %1586 = vmatpush.msrb.mxu2 %v578_v20  ;;  %v922_v1 = vld [vmem:[#allocation11 + $0xd78] sm:$0xff]  ;;  %v1059_v19 = vadd.f32 %v2046_v12, %v1039_v6  ;;  %v1239_v20 = vadd.f32 %v1238_v9, %v1219_v7 }
 0x1eb   :  { %1609 = vmatpush.msrb.mxu3 %v682_v23  ;;  %1622 = vmatpush.msra.mxu0 %v866_v24  ;;  %v522_v2 = vld [vmem:[#allocation11 + $0xf8] sm:$0xff] }
 0x1ec   :  { %1645 = vmatpush.msra.mxu1 %v970_v26  ;;  %1587 = vmatpush.msrb.mxu2 %v570_v27  ;;  %v626_v4 = vld [vmem:[#allocation11 + $0x438] sm:$0xff]  ;;  %v1179_v27 = vadd.f32 %v1178_v53, %v1159_v13 }
 0x1ed   :  { %1610 = vmatpush.msrb.mxu3 %v674_v28  ;;  %1623 = vmatpush.msra.mxu0 %v858_v29  ;;  %v810_v5 = vld [vmem:[#allocation11 + $0x9f8] sm:$0xff] }
 0x1ee   :  { %1646 = vmatpush.msra.mxu1 %v962_v30  ;;  %1588 = vmatpush.msrb.mxu2 %v562_v31  ;;  %v914_v8 = vld [vmem:[#allocation11 + $0xd38] sm:$0xff]  ;;  %v1079_v31 = vadd.f32 %v2048_v16, %v1059_v19 }
 0x1ef   :  { %1611 = vmatpush.msrb.mxu3 %v666_v33  ;;  %1624 = vmatpush.msra.mxu0 %v850_v34  ;;  %v514_v10 = vld [vmem:[#allocation11 + $0xb8] sm:$0xff]  ;;  %v1259_v33 = vadd.f32 %v1258_v17, %v1239_v20 }
 0x1f0   :  { %1647 = vmatpush.msra.mxu1 %v954_v37  ;;  %1589 = vmatpush.msrb.mxu2 %v554_v38  ;;  %v802_v11 = vld [vmem:[#allocation11 + $0x9b8] sm:$0xff]  ;;  %v1662_v38 = vmax.f32 %v1179_v27, 0.0  ;;  %v1099_v43 = vadd.f32 %v2050_v21, %v1079_v31 }
 0x1f1   :  { %1612 = vmatpush.msrb.mxu3 %v658_v40  ;;  %1625 = vmatpush.msra.mxu0 %v842_v41  ;;  %v906_v14 = vld [vmem:[#allocation11 + $0xcf8] sm:$0xff] }
 0x1f2   :  { %1648 = vmatpush.msra.mxu1 %v946_v44  ;;  %1590 = vmatpush.msrb.mxu2 %v546_v45  ;;  %v506_v0 = vld [vmem:[#allocation11 + $0x78] sm:$0xff]  ;;  %v1663_v44 = vmax.f32 %v1259_v33, 0.0  ;;  %v1677_v46 = vrot.slane %v1662_v38, 6 }
 0x1f3   :  { %1613 = vmatpush.msrb.mxu3 %v650_v48  ;;  %1626 = vmatpush.msra.mxu0 %v834_v49  ;;  %v794_v18 = vld [vmem:[#allocation11 + $0x978] sm:$0xff] }
 0x1f4   :  { %1649 = vmatpush.msra.mxu1 %v938_v51  ;;  %1591 = vmatpush.msrb.mxu2 %v538_v52  ;;  %v898_v22 = vld [vmem:[#allocation11 + $0xcb8] sm:$0xff]  ;;  %v1678_v48 = vrot.slane %v1663_v44, 4 }
 0x1f5   :  { %1614 = vmatpush.msrb.mxu3 %v642_v54  ;;  %1627 = vmatpush.msra.mxu0 %v826_v56  ;;  %v498_v23 = vld [vmem:[#allocation11 + $0x38] sm:$0xff]  ;;  %v1298_v30 = vpop.f32.mrf.mxu3 }
 0x1f6   :  { %1650 = vmatpush.msra.mxu1 %v930_v59  ;;  %1592 = vmatpush.msrb.mxu2 %v530_v60  ;;  %v786_v24 = vld [vmem:[#allocation11 + $0x938] sm:$0xff]  ;;  %v1011_v59 = vperm.slane %v2053_v32, 6 }
 0x1f7   :  { %1615 = vmatpush.msrb.mxu3 %v634_v61  ;;  %1628 = vmatpush.msra.mxu0 %v818_v62  ;;  %v890_v28 = vld [vmem:[#allocation11 + $0xc78] sm:$0xff] }
 0x1f8   :  { %1651 = vmatpush.msra.mxu1 %v922_v1  ;;  %1593 = vmatpush.msrb.mxu2 %v522_v2  ;;  %v882_v12 = vld [vmem:[#allocation11 + $0xc38] sm:$0xff] }
 0x1f9   :  { %1616 = vmatpush.msrb.mxu3 %v626_v4  ;;  %1629 = vmatpush.msra.mxu0 %v810_v5  ;;  %v770_v35 = vld [vmem:[#allocation11 + $0x8b8] sm:$0xff]  ;;  %v1338_v40 = vpop.f32.mrf.mxu1 }
 0x1fa   :  { %1652 = vmatpush.msra.mxu1 %v914_v8  ;;  %1617 = vmatmul.f32.vlgmr.msrb.gmra.mxu3 %v2009_v25  ;;  %v778_v25 = vld [vmem:[#allocation11 + $0x8f8] sm:$0xff]  ;;  %v1012_v8 = vperm.slane %v2053_v32, 7 }
 0x1fb   :  { %1594 = vmatpush.msrb.mxu2 %v514_v10  ;;  %1630 = vmatpush.msra.mxu0 %v802_v11  ;;  %v762_v41 = vld [vmem:[#allocation11 + $0x878] sm:$0xff] }
 0x1fc   :  { %1653 = vmatpush.msra.mxu1 %v906_v14  ;;  %v1278_v26 = vpop.f32.mrf.mxu2  ;;  %v754_v45 = vld [vmem:[#allocation11 + $0x838] sm:$0xff] }
 0x1fd   :  { %1595 = vmatpush.msrb.mxu2 %v506_v0  ;;  %1631 = vmatpush.msra.mxu0 %v794_v18  ;;  %v1279_v29 = vadd.f32 %v1278_v26, %v1008_v15 }
 0x1fe   :  { %1654 = vmatpush.msra.mxu1 %v898_v22 }
 0x1ff   :  { %1596 = vmatpush.msrb.mxu2 %v498_v23  ;;  %1632 = vmatpush.msra.mxu0 %v786_v24  ;;  %v1299_v34 = vadd.f32 %v1298_v30, %v1279_v29  ;;  %v1318_v37 = vpop.f32.mrf.mxu0 }
 0x200   :  { %1655 = vmatpush.msra.mxu1 %v890_v28  ;;  %1597 = vmatmul.f32.vlgmr.msrb.gmra.mxu2 %v2012_v36  ;;  %v1661_v36 = vmax.f32 %v1099_v43, 0.0 }
 0x201   :  { %1633 = vmatpush.msra.mxu0 %v778_v25  ;;  %v1319_v39 = vadd.f32 %v1318_v37, %v1299_v34 }
 0x202   :  { %1656 = vmatpush.msra.mxu1 %v882_v12  ;;  %v1684_v21 = vsel %vm1683_vm1, %v1661_v36, %v1677_v46 }
 0x203   :  { %1657 = vmatmul.f32.vlgmr.msra.gmra.mxu1 %v2015_v42  ;;  %1634 = vmatpush.msra.mxu0 %v770_v35  ;;  %v1339_v16 = vadd.f32 %v1338_v40, %v1319_v39 }
 0x205   :  { %1635 = vmatpush.msra.mxu0 %v762_v41  ;;  %v1664_v47 = vmax.f32 %v1339_v16, 0.0 }
 0x207   :  { %1636 = vmatpush.msra.mxu0 %v754_v45  ;;  %v1679_v49 = vrot.slane %v1664_v47, 2 }
 0x208   :  { %1637 = vmatmul.f32.vlgmr.msra.gmra.mxu0 %v2019_v55 }
 0x209   :  { %v1686_v50 = vsel %vm1685_vm2, %v1678_v48, %v1679_v49 }
 0x20a   :  { %v1688_v42 = vsel %vm1687_vm3, %v1684_v21, %v1686_v50 }
 0x20b   :  { %1694 = vst [vmem:[#allocation14] sm:$0xff] %v1688_v42 }
 0x217   :  { %v1378_v52 = vpop.f32.mrf.mxu3 }
 0x21b   :  { %v1418_v56 = vpop.f32.mrf.mxu1 }
 0x21e   :  { %v1358_v51 = vpop.f32.mrf.mxu2 }
 0x21f   :  { %v1359_v4 = vadd.f32 %v1358_v51, %v1009_v63 }
 0x221   :  { %v1398_v53 = vpop.f32.mrf.mxu0  ;;  %v1379_v10 = vadd.f32 %v1378_v52, %v1359_v4 }
 0x223   :  { %v1399_v0 = vadd.f32 %v1398_v53, %v1379_v10 }
 0x225   :  { %v1419_v26 = vadd.f32 %v1418_v56, %v1399_v0 }
 0x227   :  { %v1665_v32 = vmax.f32 %v1419_v26, 0.0 }
 0x239   :  { %v1458_v58 = vpop.f32.mrf.mxu3 }
 0x23d   :  { %v1498_v62 = vpop.f32.mrf.mxu1 }
 0x240   :  { %v1438_v54 = vpop.f32.mrf.mxu2 }
 0x241   :  { %v1439_v55 = vadd.f32 %v1438_v54, %v1010_v57 }
 0x243   :  { %v1478_v60 = vpop.f32.mrf.mxu0  ;;  %v1459_v2 = vadd.f32 %v1458_v58, %v1439_v55 }
 0x245   :  { %v1479_v7 = vadd.f32 %v1478_v60, %v1459_v2 }
 0x247   :  { %v1499_v14 = vadd.f32 %v1498_v62, %v1479_v7 }
 0x249   :  { %v1666_v22 = vmax.f32 %v1499_v14, 0.0 }
 0x24b   :  { %v1680_v29 = vrot.slane %v1666_v22, 6 }
 0x24d   :  { %v1689_v33 = vsel %vm1683_vm1, %v1665_v32, %v1680_v29 }
 0x25b   :  { %v1538_v3 = vpop.f32.mrf.mxu3 }
 0x25f   :  { %v1578_v9 = vpop.f32.mrf.mxu1 }
 0x262   :  { %v1518_v61 = vpop.f32.mrf.mxu2 }
 0x263   :  { %v1519_v1 = vadd.f32 %v1518_v61, %v1011_v59 }
 0x265   :  { %v1539_v5 = vadd.f32 %v1538_v3, %v1519_v1  ;;  %v1558_v6 = vpop.f32.mrf.mxu0 }
 0x267   :  { %v1559_v11 = vadd.f32 %v1558_v6, %v1539_v5 }
 0x269   :  { %v1579_v18 = vadd.f32 %v1578_v9, %v1559_v11 }
 0x26b   :  { %v1667_v27 = vmax.f32 %v1579_v18, 0.0 }
 0x26d   :  { %v1681_v25 = vrot.slane %v1667_v27, 4 }
 0x27d   :  { %v1618_v17 = vpop.f32.mrf.mxu3 }
 0x280   :  { %v1658_v24 = vpop.f32.mrf.mxu1 }
 0x283   :  { %v1598_v13 = vpop.f32.mrf.mxu2 }
 0x284   :  { %v1599_v15 = vadd.f32 %v1598_v13, %v1012_v8 }
 0x285   :  { %v1638_v20 = vpop.f32.mrf.mxu0 }
 0x286   :  { %v1619_v19 = vadd.f32 %v1618_v17, %v1599_v15 }
 0x288   :  { %v1639_v23 = vadd.f32 %v1638_v20, %v1619_v19 }
 0x28a   :  { %v1659_v28 = vadd.f32 %v1658_v24, %v1639_v23 }
 0x28c   :  { %v1668_v30 = vmax.f32 %v1659_v28, 0.0 }
 0x28e   :  { %v1682_v31 = vrot.slane %v1668_v30, 2 }
 0x290   :  { %v1690_v12 = vsel %vm1685_vm2, %v1681_v25, %v1682_v31 }
 0x291   :  { %v1691_v34 = vsel %vm1687_vm3, %v1689_v33, %v1690_v12 }
 0x292   :  { %1695 = vst [vmem:[#allocation14 + $0x8] sm:$0xff] %v1691_v34 }
 0x293   :  { %1706 = dma.vmem_to_hbm [thread:$0]  %s1702_s6, 256, %s1704_s15, [#allocation4]  }
 0x294   :  { %1932 = dma.done.wait [#allocation4], 256  }
 0x295   :  { %1933 = vsyncadd [#allocation4], 4294967040 }
 0x296   :  { %1711 = vsyncpa [#allocation3], 1 }
 0x297   :  { %1712 = vsyncpa [#allocation6], 1 }
 0x298   :  { %1713 = vsyncpa [#allocation9], 1 }
 0x299   :  { %1714 = vsyncpa [#allocation12], 1 }
 0x29a   :  { %1715 = vsyncpa [#allocation4], 1 }

</bundles_post_ra>
